<compile_context>
chip_gen: v7x
topology: tpu7x:2x2x1
jax: 0.10.0
libtpu: 0.0.40
codegen_flags: <defaults>
</compile_context>

<pallas_src>
import math

import jax
import jax.numpy as jnp
import numpy as np
from jax.experimental import pallas as pl
from jax.experimental.pallas import tpu as pltpu

# True f32 matmuls everywhere (reference einsums AND the traced kernel dots) so
# the numerics agree; XLA's default f32 matmul on TPU rounds through bf16.
jax.config.update("jax_default_matmul_precision", "float32")


def pointer_network_kernel(x_ref,      # [BB, L, D]   mxu dtype
                           bias_ref,   # [BB, L]      f32 additive mask bias (0 / -inf)
                           c0_ref,     # [BB, H]      f32
                           vsel_ref,   # [BB, A*Dh]   f32: one_hot(action) (x) v
                           w1c_ref,    # [D, A*Dh]    mxu dtype (actions concatenated)
                           b1c_ref,    # [1, A*Dh]    f32
                           w2c_ref,    # [H, A*Dh]    mxu dtype
                           b2c_ref,    # [1, A*Dh]    f32
                           wsru_ref,   # [D, 3H]      mxu dtype
                           bsru_ref,   # [1, 2H]      f32
                           s_out_ref,  # [BB, L]      f32
                           e_out_ref): # [BB, L]      f32
    BB, L, D = x_ref.shape
    H = c0_ref.shape[1]
    ADh = w1c_ref.shape[1]
    mxu_dt = w1c_ref.dtype

    x = x_ref[...]
    bias = bias_ref[...]
    c0 = c0_ref[...]

    # x-side projection for all BB rows and all actions: ONE MXU matmul per grid
    # step, computed once and reused for both the s- and e-logit passes.
    # (L is a multiple of 8, so the [BB, L, D] <-> [BB*L, D] reshape is a no-op.)
    pre = jnp.dot(x.reshape(BB * L, D), w1c_ref[...],
                  preferred_element_type=jnp.float32)
    pre = (pre + b1c_ref[...]).reshape(BB, L, ADh)            # [BB, L, A*Dh] f32

    # Selection weights: zero outside the chosen action's Dh slice, so the final
    # lane reduce contracts over Dh and picks the action in one pass (hoisted
    # broadcast; reused by both attention passes).
    v_b = jnp.broadcast_to(vsel_ref[...][:, None, :], (BB, L, ADh))

    def attn_probs(y):                                        # y: [BB, H] f32
        yt = jnp.dot(y.astype(mxu_dt), w2c_ref[...],
                     preferred_element_type=jnp.float32) + b2c_ref[...]  # [BB, A*Dh]
        h = jnp.tanh(pre + yt[:, None, :])                    # [BB, L, A*Dh]
        lg = jnp.sum(h * v_b, axis=-1) + bias                 # VPU mul + lane reduce
        m = jnp.max(lg, axis=-1, keepdims=True)
        p = jnp.exp(lg - m)
        return p / jnp.sum(p, axis=-1, keepdims=True)         # exact division

    s_probs = attn_probs(c0)                                  # [BB, L]

    # Attention pooling: VPU multiply + sublane reduce (no tiny batched matmuls).
    attn_pool = jnp.sum(x.astype(jnp.float32) * s_probs[:, :, None], axis=1)  # [BB, D]

    # SRU cell state (stand-in, see TODO above): one [BB, D] @ [D, 3H] matmul.
    u = jnp.dot(attn_pool.astype(mxu_dt), wsru_ref[...],
                preferred_element_type=jnp.float32)           # [BB, 3H]
    bsru = bsru_ref[...]
    f_gate = jax.nn.sigmoid(u[:, H:2 * H] + bsru[:, :H])
    state = f_gate * c0 + (1.0 - f_gate) * u[:, :H]           # [BB, H]

    e_probs = attn_probs(state)

    # Single full-tile stores (one unmasked store per output per grid step).
    s_out_ref[...] = s_probs
    e_out_ref[...] = e_probs


def pointer_network_action(x, x_mask, c0, actions, params, *,
                           block_b=8, mxu_dtype=jnp.float32):
    """x: [B, L, D] f32, x_mask: [B, L] bool, c0: [B, H] f32, actions: [B] int."""
    B, L, D = x.shape
    H = c0.shape[1]
    A, _, Dh = params["w1"].shape
    ADh = A * Dh

    # (BB, L)/(BB, H) blocks must satisfy the (8, 128)-or-full-dim rule, so BB is
    # either the whole batch or a multiple of 8.
    # TODO(synk): at production B, size BB so each TensorCore gets >= 2-4 grid
    #             steps (v7x has 2 cores) against the double-buffered [BB, L, D]
    #             x-block VMEM footprint, and set vmem_limit_bytes when scaling.
    BB = B if B <= block_b else block_b
    pad = (-B) % BB
    Bp = B + pad

    # Additive mask bias computed once here; reused for s- and e-logits.
    mask_bias = jnp.where(x_mask, -jnp.inf, 0.0).astype(jnp.float32)

    # Action selection folded into a tiny [B, A*Dh] tensor: one_hot(a) (x) v.
    onehot = jax.nn.one_hot(actions, A, dtype=jnp.float32)               # [B, A]
    v_sel = (onehot[:, :, None] * params["v"][None, :, :]).reshape(B, ADh)

    x_in = x.astype(mxu_dtype)
    c0_in = c0.astype(jnp.float32)
    if pad:
        x_in = jnp.pad(x_in, ((0, pad), (0, 0), (0, 0)))
        mask_bias = jnp.pad(mask_bias, ((0, pad), (0, 0)))
        c0_in = jnp.pad(c0_in, ((0, pad), (0, 0)))
        v_sel = jnp.pad(v_sel, ((0, pad), (0, 0)))

    # Action tables concatenated along the output dim -> dense batched matmuls,
    # no per-element weight gathers (in HBM or in-kernel).
    w1cat = params["w1"].transpose(1, 0, 2).reshape(D, ADh).astype(mxu_dtype)
    w2cat = params["w2"].transpose(1, 0, 2).reshape(H, ADh).astype(mxu_dtype)
    b1cat = params["b1"].reshape(1, ADh).astype(jnp.float32)
    b2cat = params["b2"].reshape(1, ADh).astype(jnp.float32)
    wsru = params["w_sru"].astype(mxu_dtype)
    bsru = params["b_sru"][None, :].astype(jnp.float32)

    grid = (Bp // BB,)

    def blk(shape):                  # per-batch-block operands
        nd = len(shape)
        return pl.BlockSpec((BB,) + tuple(shape), lambda b, _n=nd: (b,) + (0,) * _n)

    def shared(shape):               # grid-invariant: same block index every step
        # TODO(synk): at production sizes single-buffer these (pl.Buffered(1))
        #             or keep them in HBM + manual DMA to halve resident weight
        #             VMEM on v7x (64 MiB).
        nd = len(shape)
        return pl.BlockSpec(tuple(shape), lambda b, _n=nd: (0,) * _n)

    s_probs, e_probs = pl.pallas_call(
        pointer_network_kernel,
        out_shape=(jax.ShapeDtypeStruct((Bp, L), jnp.float32),
                   jax.ShapeDtypeStruct((Bp, L), jnp.float32)),
        grid_spec=pltpu.PrefetchScalarGridSpec(
            num_scalar_prefetch=0,
            grid=grid,
            in_specs=[
                blk((L, D)),         # x
                blk((L,)),           # additive mask bias
                blk((H,)),           # c0
                blk((ADh,)),         # v_sel
                shared((D, ADh)),    # w1 (concat over actions)
                shared((1, ADh)),    # b1
                shared((H, ADh)),    # w2
                shared((1, ADh)),    # b2
                shared((D, 3 * H)),  # W_sru
                shared((1, 2 * H)),  # b_sru
            ],
            out_specs=[blk((L,)), blk((L,))],
        ),
        compiler_params=pltpu.CompilerParams(
            dimension_semantics=("parallel",)),
    )(x_in, mask_bias, c0_in, v_sel,
      w1cat, b1cat, w2cat, b2cat, wsru, bsru)

    return s_probs[:B], e_probs[:B]


def init_params(key, x_size, y_size, n_actions):
    """Mirrors SeqAttentionAction.reset_parameters + SRU weights, deterministic."""
    Dh = x_size // 4
    k1, k2, k3, k4 = jax.random.split(key, 4)
    stdv = 1.0 / math.sqrt(Dh)
    s2 = 1.0 / math.sqrt(y_size)
    return {
        "w1": jax.random.uniform(k1, (n_actions, x_size, Dh), jnp.float32, -stdv, stdv),
        "b1": jnp.zeros((n_actions, Dh), jnp.float32),
        "w2": jax.random.uniform(k2, (n_actions, y_size, Dh), jnp.float32, -stdv, stdv),
        "b2": jnp.zeros((n_actions, Dh), jnp.float32),
        "v": jax.random.uniform(k3, (n_actions, Dh), jnp.float32, -stdv, stdv),
        "w_sru": jax.random.uniform(k4, (x_size, 3 * y_size), jnp.float32, -s2, s2),
        "b_sru": jnp.zeros((2 * y_size,), jnp.float32),
    }


def reference_forward(x, x_mask, c0, actions, params):
    """Pure-JAX reference of the eval-mode PyTorch forward."""
    H = c0.shape[1]
    w1s = params["w1"][actions]
    w2s = params["w2"][actions]
    b1s = params["b1"][actions]
    b2s = params["b2"][actions]
    vs = params["v"][actions]

    def attn(y):
        x_t = jnp.einsum("bld,bdh->blh", x, w1s) + b1s[:, None, :]
        y_t = jnp.einsum("bd,bdh->bh", y, w2s) + b2s
        h = jnp.tanh(x_t + y_t[:, None, :])
        lg = jnp.einsum("blh,bh->bl", h, vs)
        return jnp.where(x_mask, -jnp.inf, lg)

    s_logits = attn(c0)
    s_probs = jax.nn.softmax(s_logits, axis=-1)
    attn_pool = jnp.einsum("bl,bld->bd", s_probs, x)
    u = attn_pool @ params["w_sru"]
    x_tilde = u[:, :H]
    f = jax.nn.sigmoid(u[:, H:2 * H] + params["b_sru"][:H])
    state = f * c0 + (1.0 - f) * x_tilde
    e_logits = attn(state)
    return jax.nn.softmax(s_logits, axis=-1), jax.nn.softmax(e_logits, axis=-1)


if __name__ == "__main__":
    # batch, seq len, x_size, y_size, n_actions (small; B > BB so the grid has
    # 2 parallel steps and the shared weight blocks are reused across steps).
    B, L, D, H, A = 16, 8, 32, 32, 4

    key = jax.random.PRNGKey(0)
    kp, kx, kc, ka = jax.random.split(key, 4)
    params = init_params(kp, D, H, A)

    x = jax.random.normal(kx, (B, L, D), jnp.float32)
    c0 = jax.random.normal(kc, (B, H), jnp.float32)
    actions = jax.random.randint(ka, (B,), 0, A, dtype=jnp.int32)
    x_mask = jnp.zeros((B, L), dtype=jnp.bool_).at[:, L - 2:].set(True)

    s_p, e_p = pointer_network_action(x, x_mask, c0, actions, params)
    jax.block_until_ready((s_p, e_p))

    s_ref, e_ref = reference_forward(x, x_mask, c0, actions, params)
    assert np.allclose(np.asarray(s_p), np.asarray(s_ref), rtol=1e-4, atol=2e-4), \
        "s_probs mismatch"
    assert np.allclose(np.asarray(e_p), np.asarray(e_ref), rtol=1e-4, atol=2e-4), \
        "e_probs mismatch"

    print("KERNEL_OK")
</pallas_src>

<mosaic_0001>
module attributes {stable_mosaic.version = 11 : i64} {
  func.func @pointer_network_kernel(%arg0: i32, %arg1: memref<8x8x32xf32, #tpu.memory_space<vmem>>, %arg2: memref<8x8xf32, #tpu.memory_space<vmem>>, %arg3: memref<8x32xf32, #tpu.memory_space<vmem>>, %arg4: memref<8x32xf32, #tpu.memory_space<vmem>>, %arg5: memref<32x32xf32, #tpu.memory_space<vmem>>, %arg6: memref<1x32xf32, #tpu.memory_space<vmem>>, %arg7: memref<32x32xf32, #tpu.memory_space<vmem>>, %arg8: memref<1x32xf32, #tpu.memory_space<vmem>>, %arg9: memref<32x96xf32, #tpu.memory_space<vmem>>, %arg10: memref<1x64xf32, #tpu.memory_space<vmem>>, %arg11: memref<8x8xf32, #tpu.memory_space<vmem>>, %arg12: memref<8x8xf32, #tpu.memory_space<vmem>>) attributes {dimension_semantics = [#tpu.dimension_semantics<parallel>], iteration_bounds = array<i64: 2>, scalar_prefetch = 0 : i64, scratch_operands = 0 : i64, tpu.core_type = #tpu.core_type<tc>, window_params = [{transform_indices = @transform_0, window_bounds = array<i64: 8, 8, 32>}, {transform_indices = @transform_1, window_bounds = array<i64: 8, 8>}, {transform_indices = @transform_2, window_bounds = array<i64: 8, 32>}, {transform_indices = @transform_3, window_bounds = array<i64: 8, 32>}, {pipeline_mode = #tpu.pipeline_mode<synchronous>, transform_indices = @transform_4, window_bounds = array<i64: 32, 32>}, {pipeline_mode = #tpu.pipeline_mode<synchronous>, transform_indices = @transform_5, window_bounds = array<i64: 1, 32>}, {pipeline_mode = #tpu.pipeline_mode<synchronous>, transform_indices = @transform_6, window_bounds = array<i64: 32, 32>}, {pipeline_mode = #tpu.pipeline_mode<synchronous>, transform_indices = @transform_7, window_bounds = array<i64: 1, 32>}, {pipeline_mode = #tpu.pipeline_mode<synchronous>, transform_indices = @transform_8, window_bounds = array<i64: 32, 96>}, {pipeline_mode = #tpu.pipeline_mode<synchronous>, transform_indices = @transform_9, window_bounds = array<i64: 1, 64>}, {transform_indices = @transform_10, window_bounds = array<i64: 8, 8>}, {transform_indices = @transform_11, window_bounds = array<i64: 8, 8>}]} {
    %c0 = arith.constant 0 : index
    %c0_0 = arith.constant 0 : index
    %c0_1 = arith.constant 0 : index
    %0 = vector.load %arg1[%c0, %c0_0, %c0_1] : memref<8x8x32xf32, #tpu.memory_space<vmem>>, vector<8x8x32xf32>
    %c0_2 = arith.constant 0 : index
    %c0_3 = arith.constant 0 : index
    %1 = vector.load %arg2[%c0_2, %c0_3] : memref<8x8xf32, #tpu.memory_space<vmem>>, vector<8x8xf32>
    %c0_4 = arith.constant 0 : index
    %c0_5 = arith.constant 0 : index
    %2 = vector.load %arg3[%c0_4, %c0_5] : memref<8x32xf32, #tpu.memory_space<vmem>>, vector<8x32xf32>
    %3 = vector.shape_cast %0 : vector<8x8x32xf32> to vector<64x32xf32>
    %c0_6 = arith.constant 0 : index
    %c0_7 = arith.constant 0 : index
    %4 = vector.load %arg5[%c0_6, %c0_7] : memref<32x32xf32, #tpu.memory_space<vmem>>, vector<32x32xf32>
    %cst = arith.constant dense<0.000000e+00> : vector<64x32xf32>
    %5 = tpu.matmul %3, %4, %cst {dimension_numbers = #tpu.dot_dimension_numbers<[1], [0], [0], [1], [0, 0, 1, 1], [], []>, precision = #tpu.contract_precision<fp32>} : vector<64x32xf32>, vector<32x32xf32>, vector<64x32xf32> -> vector<64x32xf32>
    %c0_8 = arith.constant 0 : index
    %c0_9 = arith.constant 0 : index
    %6 = vector.load %arg6[%c0_8, %c0_9] : memref<1x32xf32, #tpu.memory_space<vmem>>, vector<1x32xf32>
    %7 = vector.broadcast %6 : vector<1x32xf32> to vector<64x32xf32>
    %8 = arith.addf %5, %7 : vector<64x32xf32>
    %9 = vector.shape_cast %8 : vector<64x32xf32> to vector<8x8x32xf32>
    %c0_10 = arith.constant 0 : index
    %c0_11 = arith.constant 0 : index
    %10 = vector.load %arg4[%c0_10, %c0_11] : memref<8x32xf32, #tpu.memory_space<vmem>>, vector<8x32xf32>
    %11 = vector.shape_cast %10 : vector<8x32xf32> to vector<8x1x32xf32>
    %12 = vector.shape_cast %11 : vector<8x1x32xf32> to vector<8x1x32xf32>
    %13 = vector.broadcast %12 : vector<8x1x32xf32> to vector<8x8x32xf32>
    %c0_12 = arith.constant 0 : index
    %c0_13 = arith.constant 0 : index
    %14 = vector.load %arg7[%c0_12, %c0_13] : memref<32x32xf32, #tpu.memory_space<vmem>>, vector<32x32xf32>
    %cst_14 = arith.constant dense<0.000000e+00> : vector<8x32xf32>
    %15 = tpu.matmul %2, %14, %cst_14 {dimension_numbers = #tpu.dot_dimension_numbers<[1], [0], [0], [1], [0, 0, 1, 1], [], []>, precision = #tpu.contract_precision<fp32>} : vector<8x32xf32>, vector<32x32xf32>, vector<8x32xf32> -> vector<8x32xf32>
    %c0_15 = arith.constant 0 : index
    %c0_16 = arith.constant 0 : index
    %16 = vector.load %arg8[%c0_15, %c0_16] : memref<1x32xf32, #tpu.memory_space<vmem>>, vector<1x32xf32>
    %17 = vector.broadcast %16 : vector<1x32xf32> to vector<8x32xf32>
    %18 = arith.addf %15, %17 : vector<8x32xf32>
    %19 = vector.shape_cast %18 : vector<8x32xf32> to vector<8x1x32xf32>
    %20 = vector.broadcast %19 : vector<8x1x32xf32> to vector<8x8x32xf32>
    %21 = arith.addf %9, %20 : vector<8x8x32xf32>
    %22 = math.tanh %21 : vector<8x8x32xf32>
    %23 = arith.mulf %22, %13 : vector<8x8x32xf32>
    %cst_17 = arith.constant dense<0.000000e+00> : vector<8x8xf32>
    %24 = vector.multi_reduction <add>, %23, %cst_17 [2] : vector<8x8x32xf32> to vector<8x8xf32>
    %25 = arith.addf %24, %1 : vector<8x8xf32>
    %cst_18 = arith.constant dense<0xFF800000> : vector<8xf32>
    %26 = vector.multi_reduction <maximumf>, %25, %cst_18 [1] : vector<8x8xf32> to vector<8xf32>
    %27 = vector.shape_cast %26 : vector<8xf32> to vector<8x1xf32>
    %28 = vector.broadcast %27 : vector<8x1xf32> to vector<8x8xf32>
    %29 = arith.subf %25, %28 : vector<8x8xf32>
    %30 = math.exp %29 : vector<8x8xf32>
    %cst_19 = arith.constant dense<0.000000e+00> : vector<8xf32>
    %31 = vector.multi_reduction <add>, %30, %cst_19 [1] : vector<8x8xf32> to vector<8xf32>
    %32 = vector.shape_cast %31 : vector<8xf32> to vector<8x1xf32>
    %33 = vector.broadcast %32 : vector<8x1xf32> to vector<8x8xf32>
    %34 = arith.divf %30, %33 : vector<8x8xf32>
    %35 = vector.shape_cast %34 : vector<8x8xf32> to vector<8x8x1xf32>
    %36 = vector.broadcast %35 : vector<8x8x1xf32> to vector<8x8x32xf32>
    %37 = arith.mulf %0, %36 : vector<8x8x32xf32>
    %cst_20 = arith.constant dense<0.000000e+00> : vector<8x32xf32>
    %38 = vector.multi_reduction <add>, %37, %cst_20 [1] : vector<8x8x32xf32> to vector<8x32xf32>
    %c0_21 = arith.constant 0 : index
    %c0_22 = arith.constant 0 : index
    %39 = vector.load %arg9[%c0_21, %c0_22] : memref<32x96xf32, #tpu.memory_space<vmem>>, vector<32x96xf32>
    %cst_23 = arith.constant dense<0.000000e+00> : vector<8x96xf32>
    %40 = tpu.matmul %38, %39, %cst_23 {dimension_numbers = #tpu.dot_dimension_numbers<[1], [0], [0], [1], [0, 0, 1, 1], [], []>, precision = #tpu.contract_precision<fp32>} : vector<8x32xf32>, vector<32x96xf32>, vector<8x96xf32> -> vector<8x96xf32>
    %c0_24 = arith.constant 0 : index
    %c0_25 = arith.constant 0 : index
    %41 = vector.load %arg10[%c0_24, %c0_25] : memref<1x64xf32, #tpu.memory_space<vmem>>, vector<1x64xf32>
    %42 = vector.extract_strided_slice %40 {offsets = [0, 32], sizes = [8, 32], strides = [1, 1]} : vector<8x96xf32> to vector<8x32xf32>
    %43 = vector.extract_strided_slice %41 {offsets = [0, 0], sizes = [1, 32], strides = [1, 1]} : vector<1x64xf32> to vector<1x32xf32>
    %44 = vector.broadcast %43 : vector<1x32xf32> to vector<8x32xf32>
    %45 = arith.addf %42, %44 : vector<8x32xf32>
    %46 = arith.negf %45 : vector<8x32xf32>
    %47 = math.exp %46 : vector<8x32xf32>
    %cst_26 = arith.constant 1.000000e+00 : f32
    %48 = vector.broadcast %cst_26 : f32 to vector<8x32xf32>
    %49 = arith.addf %48, %47 : vector<8x32xf32>
    %50 = arith.divf %48, %49 : vector<8x32xf32>
    %51 = arith.mulf %50, %2 : vector<8x32xf32>
    %cst_27 = arith.constant 1.000000e+00 : f32
    %52 = vector.broadcast %cst_27 : f32 to vector<8x32xf32>
    %53 = arith.subf %52, %50 : vector<8x32xf32>
    %54 = vector.extract_strided_slice %40 {offsets = [0, 0], sizes = [8, 32], strides = [1, 1]} : vector<8x96xf32> to vector<8x32xf32>
    %55 = arith.mulf %53, %54 : vector<8x32xf32>
    %56 = arith.addf %51, %55 : vector<8x32xf32>
    %c0_28 = arith.constant 0 : index
    %c0_29 = arith.constant 0 : index
    %57 = vector.load %arg7[%c0_28, %c0_29] : memref<32x32xf32, #tpu.memory_space<vmem>>, vector<32x32xf32>
    %cst_30 = arith.constant dense<0.000000e+00> : vector<8x32xf32>
    %58 = tpu.matmul %56, %57, %cst_30 {dimension_numbers = #tpu.dot_dimension_numbers<[1], [0], [0], [1], [0, 0, 1, 1], [], []>, precision = #tpu.contract_precision<fp32>} : vector<8x32xf32>, vector<32x32xf32>, vector<8x32xf32> -> vector<8x32xf32>
    %c0_31 = arith.constant 0 : index
    %c0_32 = arith.constant 0 : index
    %59 = vector.load %arg8[%c0_31, %c0_32] : memref<1x32xf32, #tpu.memory_space<vmem>>, vector<1x32xf32>
    %60 = vector.broadcast %59 : vector<1x32xf32> to vector<8x32xf32>
    %61 = arith.addf %58, %60 : vector<8x32xf32>
    %62 = vector.shape_cast %61 : vector<8x32xf32> to vector<8x1x32xf32>
    %63 = vector.broadcast %62 : vector<8x1x32xf32> to vector<8x8x32xf32>
    %64 = arith.addf %9, %63 : vector<8x8x32xf32>
    %65 = math.tanh %64 : vector<8x8x32xf32>
    %66 = arith.mulf %65, %13 : vector<8x8x32xf32>
    %cst_33 = arith.constant dense<0.000000e+00> : vector<8x8xf32>
    %67 = vector.multi_reduction <add>, %66, %cst_33 [2] : vector<8x8x32xf32> to vector<8x8xf32>
    %68 = arith.addf %67, %1 : vector<8x8xf32>
    %cst_34 = arith.constant dense<0xFF800000> : vector<8xf32>
    %69 = vector.multi_reduction <maximumf>, %68, %cst_34 [1] : vector<8x8xf32> to vector<8xf32>
    %70 = vector.shape_cast %69 : vector<8xf32> to vector<8x1xf32>
    %71 = vector.broadcast %70 : vector<8x1xf32> to vector<8x8xf32>
    %72 = arith.subf %68, %71 : vector<8x8xf32>
    %73 = math.exp %72 : vector<8x8xf32>
    %cst_35 = arith.constant dense<0.000000e+00> : vector<8xf32>
    %74 = vector.multi_reduction <add>, %73, %cst_35 [1] : vector<8x8xf32> to vector<8xf32>
    %75 = vector.shape_cast %74 : vector<8xf32> to vector<8x1xf32>
    %76 = vector.broadcast %75 : vector<8x1xf32> to vector<8x8xf32>
    %77 = arith.divf %73, %76 : vector<8x8xf32>
    %c0_36 = arith.constant 0 : index
    %c0_37 = arith.constant 0 : index
    %78 = vector.load %arg11[%c0_36, %c0_37] : memref<8x8xf32, #tpu.memory_space<vmem>>, vector<8x8xf32>
    tpu.vector_store %arg11[%c0_36, %c0_37], %34 {strides = array<i32>} : memref<8x8xf32, #tpu.memory_space<vmem>>, vector<8x8xf32>,
    %c0_38 = arith.constant 0 : index
    %c0_39 = arith.constant 0 : index
    %79 = vector.load %arg12[%c0_38, %c0_39] : memref<8x8xf32, #tpu.memory_space<vmem>>, vector<8x8xf32>
    tpu.vector_store %arg12[%c0_38, %c0_39], %77 {strides = array<i32>} : memref<8x8xf32, #tpu.memory_space<vmem>>, vector<8x8xf32>,
    return
  }
  func.func @transform_0(%arg0: i32) -> (i32, i32, i32) {
    %c0_i32 = arith.constant 0 : i32
    %c0_i32_0 = arith.constant 0 : i32
    %c0_i32_1 = arith.constant 0 : i32
    return %arg0, %c0_i32, %c0_i32_0 : i32, i32, i32
  }
  func.func @transform_1(%arg0: i32) -> (i32, i32) {
    %c0_i32 = arith.constant 0 : i32
    %c0_i32_0 = arith.constant 0 : i32
    return %arg0, %c0_i32 : i32, i32
  }
  func.func @transform_2(%arg0: i32) -> (i32, i32) {
    %c0_i32 = arith.constant 0 : i32
    %c0_i32_0 = arith.constant 0 : i32
    return %arg0, %c0_i32 : i32, i32
  }
  func.func @transform_3(%arg0: i32) -> (i32, i32) {
    %c0_i32 = arith.constant 0 : i32
    %c0_i32_0 = arith.constant 0 : i32
    return %arg0, %c0_i32 : i32, i32
  }
  func.func @transform_4(%arg0: i32) -> (i32, i32) {
    %c0_i32 = arith.constant 0 : i32
    %c0_i32_0 = arith.constant 0 : i32
    %c0_i32_1 = arith.constant 0 : i32
    return %c0_i32, %c0_i32_0 : i32, i32
  }
  func.func @transform_5(%arg0: i32) -> (i32, i32) {
    %c0_i32 = arith.constant 0 : i32
    %c0_i32_0 = arith.constant 0 : i32
    %c0_i32_1 = arith.constant 0 : i32
    return %c0_i32, %c0_i32_0 : i32, i32
  }
  func.func @transform_6(%arg0: i32) -> (i32, i32) {
    %c0_i32 = arith.constant 0 : i32
    %c0_i32_0 = arith.constant 0 : i32
    %c0_i32_1 = arith.constant 0 : i32
    return %c0_i32, %c0_i32_0 : i32, i32
  }
  func.func @transform_7(%arg0: i32) -> (i32, i32) {
    %c0_i32 = arith.constant 0 : i32
    %c0_i32_0 = arith.constant 0 : i32
    %c0_i32_1 = arith.constant 0 : i32
    return %c0_i32, %c0_i32_0 : i32, i32
  }
  func.func @transform_8(%arg0: i32) -> (i32, i32) {
    %c0_i32 = arith.constant 0 : i32
    %c0_i32_0 = arith.constant 0 : i32
    %c0_i32_1 = arith.constant 0 : i32
    return %c0_i32, %c0_i32_0 : i32, i32
  }
  func.func @transform_9(%arg0: i32) -> (i32, i32) {
    %c0_i32 = arith.constant 0 : i32
    %c0_i32_0 = arith.constant 0 : i32
    %c0_i32_1 = arith.constant 0 : i32
    return %c0_i32, %c0_i32_0 : i32, i32
  }
  func.func @transform_10(%arg0: i32) -> (i32, i32) {
    %c0_i32 = arith.constant 0 : i32
    %c0_i32_0 = arith.constant 0 : i32
    return %arg0, %c0_i32 : i32, i32
  }
  func.func @transform_11(%arg0: i32) -> (i32, i32) {
    %c0_i32 = arith.constant 0 : i32
    %c0_i32_0 = arith.constant 0 : i32
    return %arg0, %c0_i32 : i32, i32
  }
}

</mosaic_0001>

<bundles_post_ra>
// kernel: tpu_custom_call.1
= control target key start
LH: loop header
LB: loop body
LE: loop exit
PB: predicated region body
PF: predicated region fallthrough
CT: control target
= control target key end

     0   :  { %s6616_s0 = inlined_call_operand.hbm [shape: f32[16,8,32], index: 0, kind: input, shape index: {}]   ;;  %s6617_s1 = inlined_call_operand.vmem [shape: f32[16,8], index: 1, kind: input, shape index: {}]   ;;  %s6618_s2 = inlined_call_operand.hbm [shape: f32[16,32], index: 2, kind: input, shape index: {}]   ;;  %s6619_s3 = inlined_call_operand.hbm [shape: f32[16,32], index: 3, kind: input, shape index: {}]   ;;  %s6620_s4 = inlined_call_operand.vmem [shape: f32[32,32], index: 4, kind: input, shape index: {}]   ;;  %s6621_s5 = inlined_call_operand.vmem [shape: f32[1,32], index: 5, kind: input, shape index: {}]   ;;  %s6622_s6 = inlined_call_operand.hbm [shape: f32[32,32], index: 6, kind: input, shape index: {}]   ;;  %s6623_s7 = inlined_call_operand.vmem [shape: f32[1,32], index: 7, kind: input, shape index: {}]   ;;  %s6624_s8 = inlined_call_operand.hbm [shape: f32[32,96], index: 8, kind: input, shape index: {}]   ;;  %s6625_s9 = inlined_call_operand.vmem [shape: f32[1,64], index: 9, kind: input, shape index: {}]   ;;  %s6626_s10 = inlined_call_operand.vmem [shape: f32[16,8], index: 10, kind: output, shape index: {0}]   ;;  %s6627_s11 = inlined_call_operand.vmem [shape: f32[16,8], index: 11, kind: output, shape index: {1}]  }
   0x1   :  { %6680 = sst [smem:[#allocation38_spill]] %s6618_s2 }
   0x2   :  { %6681 = sst [smem:[#allocation39_spill]] %s6622_s6 }
   0x3   :  { %6682 = sst [smem:[#allocation40_spill]] %s6626_s10 }
   0x4   :  { %6683 = sst [smem:[#allocation41_spill]] %s6627_s11 }
   0x5   :  { %17 = vsyncpa [#allocation3], 0 }
   0x6   :  { %19 = vsyncpa [#allocation3 + $0x1], 0 }
   0x7   :  { %20 = vsyncpa [#allocation5], 0 }
   0x8   :  { %22 = vsyncpa [#allocation5 + $0x1], 0 }
   0x9   :  { %23 = vsyncpa [#allocation8], 0  ;;  %s5482_s17 = smov 0   ;;  %s5484_s18 = smov 0  }
   0xa   :  { %s5486_s19 = smov 0   ;;  %s5488_s20 = smov 0  }
   0xb LB: > { %6684 = sst [smem:[#allocation13_spill]] %s5402_s19  ;;  %s5501_s21 = sadd.s32 4294967295, %s5406_s20   ;;  %s5406_s20 = sphi %s5488_s20, %s6757_s20   ;;  %s5402_s19 = sphi %s5486_s19, %s6759_s19   ;;  %s5398_s18 = sphi %s5484_s18, %s6761_s18   ;;  %s5394_s17 = sphi %s5482_s17, %s6760_s17  }
   0xc   : > { %p49_p0 = scmp.ne.s32.totalorder %s5398_s18, %s5394_s17  ;;  %p6628_p1 = scmp.eq.s32.totalorder %s5501_s21, 0 }
   0xd   : > { %p4279_p2 = scmp.ge.s32.totalorder %s5406_s20, 1  ;;  %p316_p3 = scmp.lt.s32.totalorder %s5406_s20, 3 }
   0xe   : > { %p5509_p4 = por %p6628_p1, %p49_p0  ;;  %s5408_s24 = smov [#allocation7]  }
   0xf   : > { %p5513_p5 = pnand %p4279_p2, %p316_p3  ;;  %s334_s25 = sshll.u32 %s5408_s24, 4  ;;  %s335_s25 = int_to_ptr.vmem [resolvable:$true] %s334_s25 }
  0x10   : > { %s6685_s22 = scalar_select %p5509_p4, 1, 0 }
  0x11   : > { %s6686_s23 = scalar_select %p5513_p5, 1, 0 }
  0x12   : > { %p5040_p6 = pneg %p5513_p5  ;;  %s5526_s27 = sadd.s32 1, %s5406_s20  }
  0x13   : > { %6688 = sst [smem:[#allocation14_spill]] %s5526_s27  ;;  %s36_s28 = sadd.s32 1, %s5402_s19 }
  0x14   : > { %p5521_p7 = pnand %p5040_p6, %p6628_p1  ;;  %s33_s29 = ssub.s32 %s5406_s20, %s5526_s27 }
  0x15   : > { %s6689_s6 = sld [smem:[#allocation39_spill]] }
  0x16   : > { %s6687_s26 = scalar_select %p5521_p7, 1, 0 }
  0x17   : > { %p6639_p9 = pneg %p5521_p7 }
  0x1b   : > { %s5218_s13 = scalar_lea.hbm %s6689_s6, 512 }
  0x1c   : > { %p5219_p8 = scmp.ne.s32.totalorder %s6689_s6, %s5218_s13  ;;  %p5225_p12 = scmp.lt.u32.totalorder %s5218_s13, %s6689_s6 }
  0x1e   : > { %p5221_p10 = pnand %p6639_p9, %p5219_p8 }
  0x20   : > { %p5222_p11 = pneg %p5221_p10 }
  0x22   : > { %p5227_p13 = pnand %p5225_p12, %p5222_p11 }
  0x24   : > { %5230 = shalt.err (!%p5227_p13)
}
  0x25   : > { %s5231_s24 = scalar_lea.vmem %s335_s25, 512  ;;  %p5239_p6 = scmp.lt.s32.totalorder %s335_s25, %s335_s25 }
  0x26   : > { %p5232_p0 = scmp.ne.s32.totalorder %s335_s25, %s5231_s24  ;;  %p5240_p1 = scmp.lt.s32.totalorder %s5231_s24, %s5231_s24 }
  0x28   : > { %p5234_p2 = pnand %p5232_p0, %p6639_p9  ;;  %p5241_p4 = por %p5240_p1, %p5239_p6 }
  0x2a   : > { %p5235_p3 = pneg %p5234_p2 }
  0x2c   : > { %p5242_p5 = pnand %p5241_p4, %p5235_p3 }
  0x2e   : > { %5245 = shalt.err (!%p5242_p5)
}
  0x2f   : > { %s6633_s30 = smov 128   ;;  %s6635_s12 = smov 8  }
  0x30   : > { %5043 = dma.hbm_to_vmem [thread:$0]  (!%p5521_p7), %s6689_s6, 512, %s335_s25, [#allocation8], %s6633_s30, %s6633_s30, %s6635_s12  }
  0x31   : > { %p34_p1 = scmp.eq.s32.totalorder %s33_s29, 0  ;;  %p43_p4 = scmp.ne.s32.totalorder %s5402_s19, %s5398_s18 }
  0x32   : > { %p44_p5 = scmp.eq.s32.totalorder %s5406_s20, 0  ;;  %p5059_p8 = scmp.lt.s32.totalorder %s5406_s20, 2 }
  0x33   : > { %s5561_s15 = scalar_select %p34_p1, %s5402_s19, %s36_s28  }
  0x34   : > { %p45_p10 = por %p44_p5, %p43_p4  ;;  %s5564_s16 = sand.u32 1, %s5402_s19  }
  0x35   : > { %6690 = sst [smem:[#allocation15_spill]] %s5561_s15  ;;  %s395_s17 = sand.u32 1, %s5406_s20  }
  0x36   : > { %s6638_s24 = sshll.u32 %s5564_s16, 3  ;;  %p5568_p11 = pnand %p5059_p8, %p45_p10 }
  0x37   : > { %s4287_s13 = sshll.u32 %s5406_s20, 7  ;;  %s6692_s2 = sld [smem:[#allocation38_spill]] }
  0x38   : > { %s6691_s27 = scalar_select %p5568_p11, 1, 0 }
  0x39   : > { %s399_s28 = scalar_lea.vmem [#allocation4], %s6638_s24  ;;  %s5585_s15 = scalar_lea.hbm %s6619_s3, %s4287_s13 }
  0x3a   : > { %s406_s30 = sshll.u32 %s399_s28, 4  ;;  %s5587_s19 = scalar_lea.sflag [#allocation5], %s395_s17  ;;  %s5580_s30 = int_to_ptr.vmem [resolvable:$true] %s406_s30 }
  0x3b   : > { %p5593_p13 = pneg %p5568_p11 }
  0x3d   : > { %s5576_s14 = scalar_lea.hbm %s6692_s2, %s4287_s13  ;;  %s5251_s24 = scalar_lea.hbm %s6692_s2, 256 }
  0x3e   : > { %s5246_s11 = scalar_lea.hbm %s5576_s14, 128  ;;  %p5252_p3 = scmp.lt.u32.totalorder %s5576_s14, %s6692_s2 }
  0x3f   : > { %p5247_p12 = scmp.ne.s32.totalorder %s5576_s14, %s5246_s11  ;;  %p5253_p6 = scmp.lt.u32.totalorder %s5251_s24, %s5246_s11 }
  0x40   : > { %s6693_s25 = scalar_select %p5593_p13, 1, 0 }
  0x41   : > { %p5249_p0 = pnand %p5593_p13, %p5247_p12  ;;  %p5254_p1 = por %p5253_p6, %p5252_p3 }
  0x42   : > { %p5255_p4 = scmp.lt.u32.totalorder %s5246_s11, %s5576_s14 }
  0x43   : > { %p5250_p2 = pneg %p5249_p0 }
  0x44   : > { %p5256_p5 = por %p5255_p4, %p5254_p1 }
  0x46   : > { %p5257_p8 = pnand %p5256_p5, %p5250_p2 }
  0x48   : > { %5260 = shalt.err (!%p5257_p8)
}
  0x49   : > { %s5261_s17 = scalar_lea.vmem %s5580_s30, 128  ;;  %s5411_s13 = smov [#allocation4]  }
  0x4a   : > { %p5262_p10 = scmp.ne.s32.totalorder %s5580_s30, %s5261_s17  ;;  %s5266_s29 = sshll.u32 %s5411_s13, 4  ;;  %s5267_s29 = int_to_ptr.vmem [resolvable:$false] %s5266_s29 }
  0x4b   : > { %s5268_s28 = scalar_lea.vmem %s5267_s29, 256  ;;  %p5269_p9 = scmp.lt.s32.totalorder %s5580_s30, %s5267_s29 }
  0x4c   : > { %p5264_p12 = pnand %p5262_p10, %p5593_p13  ;;  %p5270_p7 = scmp.lt.s32.totalorder %s5268_s28, %s5261_s17 }
  0x4e   : > { %p5265_p0 = pneg %p5264_p12  ;;  %p5271_p3 = por %p5270_p7, %p5269_p9 }
  0x50   : > { %p5272_p6 = pnand %p5271_p3, %p5265_p0 }
  0x52   : > { %5275 = shalt.err (!%p5272_p6)
}
  0x53   : > { %5053 = dma.hbm_to_vmem [thread:$0]  (!%p5568_p11), %s5576_s14, 128, %s5580_s30, %s5587_s19  }
  0x54   : > { %s5412_s11 = smov [#allocation9]   ;;  %s4283_s6 = sshll.u32 %s5564_s16, 6 }
  0x55   : > { %s350_s24 = sshll.u32 %s5412_s11, 4  ;;  %s5276_s29 = scalar_lea.hbm %s6624_s8, 512  ;;  %s351_s24 = int_to_ptr.vmem [resolvable:$true] %s350_s24 }
  0x56   : > { %p5277_p7 = scmp.ne.s32.totalorder %s6624_s8, %s5276_s29  ;;  %p6694_p9 = scmp.ne.s32.totalorder %s6687_s26, 0 }
  0x57   : > { %p5283_p5 = scmp.lt.u32.totalorder %s5276_s29, %s6624_s8 }
  0x58   : > { %p6695_p2 = pneg %p6694_p9 }
  0x5a   : > { %p5279_p1 = pnand %p5277_p7, %p6695_p2 }
  0x5c   : > { %p5280_p4 = pneg %p5279_p1 }
  0x5e   : > { %p5285_p8 = pnand %p5283_p5, %p5280_p4 }
  0x60   : > { %5288 = shalt.err (!%p5285_p8)
}
  0x61   : > { %s5289_s30 = scalar_lea.vmem %s351_s24, 512  ;;  %p6696_p12 = pmov %p6695_p2 }
  0x62   : > { %p5290_p10 = scmp.ne.s32.totalorder %s351_s24, %s5289_s30  ;;  %p5297_p6 = scmp.lt.s32.totalorder %s351_s24, %s351_s24 }
  0x63   : > { %p5298_p11 = scmp.lt.s32.totalorder %s5289_s30, %s5289_s30 }
  0x64   : > { %p5292_p0 = pnand %p5290_p10, %p6696_p12 }
  0x65   : > { %p5299_p13 = por %p5298_p11, %p5297_p6 }
  0x66   : > { %p5293_p3 = pneg %p5292_p0 }
  0x68   : > { %p5300_p2 = pnand %p5299_p13, %p5293_p3 }
  0x6a   : > { %5303 = shalt.err (!%p5300_p2)
}
  0x6b   : > { %s6697_s14 = smov 8   ;;  %s6698_s11 = smov 128  }
  0x6c   : > { %5046 = dma.hbm_to_vmem [thread:$0]  (!%p6694_p9), %s6624_s8, 512, %s351_s24, [#allocation8], %s6698_s11, %s6698_s11, %s6697_s14  }
  0x6d   : > { %s4305_s12 = sshll.u32 %s5406_s20, 10  ;;  %s371_s13 = scalar_lea.vmem [#allocation2], %s4283_s6 }
  0x6e   : > { %s378_s29 = sshll.u32 %s371_s13, 4  ;;  %s5645_s30 = scalar_lea.hbm %s6616_s0, %s4305_s12  ;;  %s5647_s29 = int_to_ptr.vmem [resolvable:$true] %s378_s29 }
  0x6f   : > { %s368_s26 = scalar_lea.sflag [#allocation3], %s5564_s16  ;;  %s5304_s2 = scalar_lea.hbm %s5645_s30, 1024 }
  0x70   : > { %p5305_p11 = scmp.ne.s32.totalorder %s5645_s30, %s5304_s2  ;;  %p6699_p13 = scmp.ne.s32.totalorder %s6693_s25, 0 }
  0x71   : > { %s5309_s6 = scalar_lea.hbm %s6616_s0, 2048  ;;  %p5310_p1 = scmp.lt.u32.totalorder %s5645_s30, %s6616_s0 }
  0x72   : > { %p5307_p7 = pnand %p5305_p11, %p6699_p13  ;;  %p5311_p4 = scmp.lt.u32.totalorder %s5309_s6, %s5304_s2 }
  0x73   : > { %p5313_p8 = scmp.lt.u32.totalorder %s5304_s2, %s5645_s30 }
  0x74   : > { %p5308_p9 = pneg %p5307_p7  ;;  %p5312_p5 = por %p5311_p4, %p5310_p1 }
  0x76   : > { %p5314_p10 = por %p5313_p8, %p5312_p5 }
  0x78   : > { %p5315_p12 = pnand %p5314_p10, %p5308_p9 }
  0x7a   : > { %5318 = shalt.err (!%p5315_p12)
}
  0x7b   : > { %s5319_s12 = scalar_lea.vmem %s5647_s29, 1024  ;;  %s5413_s17 = smov [#allocation2]  }
  0x7c   : > { %p5320_p0 = scmp.ne.s32.totalorder %s5647_s29, %s5319_s12  ;;  %s5324_s28 = sshll.u32 %s5413_s17, 4  ;;  %s5325_s28 = int_to_ptr.vmem [resolvable:$false] %s5324_s28 }
  0x7d   : > { %s5326_s20 = scalar_lea.vmem %s5325_s28, 2048  ;;  %p5327_p2 = scmp.lt.s32.totalorder %s5647_s29, %s5325_s28 }
  0x7e   : > { %p5322_p3 = pnand %p5320_p0, %p6699_p13  ;;  %p5328_p11 = scmp.lt.s32.totalorder %s5326_s20, %s5319_s12 }
  0x80   : > { %p5323_p6 = pneg %p5322_p3  ;;  %p5329_p7 = por %p5328_p11, %p5327_p2 }
  0x82   : > { %p5330_p1 = pnand %p5329_p7, %p5323_p6 }
  0x84   : > { %5333 = shalt.err (!%p5330_p1)
}
  0x85   : > { %p6700_p9 = scmp.ne.s32.totalorder %s6691_s27, 0  ;;  %s6701_s2 = sshll.u32 %s5564_s16, 3 }
  0x86   : > { %s417_s24 = scalar_lea.vmem [#allocation6], %s6701_s2  ;;  %s5334_s10 = scalar_lea.hbm %s5585_s15, 128 }
  0x87   : > { %5050 = dma.hbm_to_vmem [thread:$0]  (!%p6700_p9), %s5645_s30, 1024, %s5647_s29, %s368_s26, %s6698_s11, %s6698_s11, %s6697_s14  }
  0x88   : > { %s424_s6 = sshll.u32 %s417_s24, 4  ;;  %p5335_p4 = scmp.ne.s32.totalorder %s5585_s15, %s5334_s10  ;;  %s425_s6 = int_to_ptr.vmem [resolvable:$true] %s424_s6 }
  0x89   : > { %s5339_s17 = scalar_lea.hbm %s6619_s3, 256  ;;  %p5340_p10 = scmp.lt.u32.totalorder %s5585_s15, %s6619_s3 }
  0x8a   : > { %p5337_p5 = pnand %p5335_p4, %p6699_p13  ;;  %p5341_p12 = scmp.lt.u32.totalorder %s5339_s17, %s5334_s10 }
  0x8b   : > { %p5343_p3 = scmp.lt.u32.totalorder %s5334_s10, %s5585_s15 }
  0x8c   : > { %p5338_p8 = pneg %p5337_p5  ;;  %p5342_p0 = por %p5341_p12, %p5340_p10 }
  0x8e   : > { %p5344_p6 = por %p5343_p3, %p5342_p0 }
  0x90   : > { %p5345_p2 = pnand %p5344_p6, %p5338_p8 }
  0x92   : > { %5348 = shalt.err (!%p5345_p2)
}
  0x93   : > { %s5349_s16 = scalar_lea.vmem %s425_s6, 128  ;;  %s5414_s14 = smov [#allocation6]  }
  0x94   : > { %p5350_p11 = scmp.ne.s32.totalorder %s425_s6, %s5349_s16  ;;  %s5354_s11 = sshll.u32 %s5414_s14, 4  ;;  %s5355_s11 = int_to_ptr.vmem [resolvable:$false] %s5354_s11 }
  0x95   : > { %s5356_s29 = scalar_lea.vmem %s5355_s11, 256  ;;  %p5357_p4 = scmp.lt.s32.totalorder %s425_s6, %s5355_s11 }
  0x96   : > { %p5352_p7 = pnand %p5350_p11, %p6699_p13  ;;  %p5358_p5 = scmp.lt.s32.totalorder %s5356_s29, %s5349_s16 }
  0x98   : > { %p5353_p1 = pneg %p5352_p7  ;;  %p5359_p9 = por %p5358_p5, %p5357_p4 }
  0x9a   : > { %p5360_p10 = pnand %p5359_p9, %p5353_p1 }
  0x9c   : > { %5363 = shalt.err (!%p5360_p10)
}
  0x9d   : > { %p6702_p12 = scmp.ne.s32.totalorder %s6691_s27, 0  ;;  %p6703_p8 = scmp.ne.s32.totalorder %s6686_s23, 0 }
  0x9f   : > { %5056 = dma.hbm_to_vmem [thread:$0]  (!%p6702_p12), %s5585_s15, 128, %s425_s6, %s5587_s19  }
  0xa0   : > { %433 = sbr.rel (%p6703_p8) target bundleno = 3146 (0xc4a), region = 60 }
  0xa7   : > { %s435_s25 = sand.u32 1, %s5398_s18   ;;  %p6704_p13 = scmp.ne.s32.totalorder %s6685_s22, 0 }
  0xa8   : > { %s4291_s30 = sshll.u32 %s435_s25, 6  ;;  %s436_s26 = scalar_lea.sflag [#allocation3], %s435_s25 }
  0xa9   : > { %s5699_s2 = scalar_lea.vmem [#allocation2], %s4291_s30 }
  0xaa   : > { %5381 = dma.done.wait (%p6704_p13), %s436_s26, 1024  }
  0xab   : > { %5383 = vsyncadd (%p6704_p13), %s436_s26, 4294966272  ;;  %s444_s27 = sand.u32 1, %s5501_s21   ;;  %s4292_s24 = sshll.u32 %s435_s25, 3 }
  0xac   : > { %s445_s19 = scalar_lea.sflag [#allocation5], %s444_s27  ;;  %s5706_s15 = scalar_lea.vmem [#allocation4], %s4292_s24 }
  0xad   : > { %5385 = dma.done.wait (%p6704_p13), %s445_s19, 256  }
  0xae   : > { %5387 = vsyncadd (%p6704_p13), %s445_s19, 4294967040  ;;  %s5712_s23 = scalar_lea.vmem [#allocation6], %s4292_s24  ;;  %p6705_p9 = scmp.eq.s32.totalorder %s5501_s21, 0 }
  0xb0   : > { %5389 = dma.done.wait (%p6705_p9), [#allocation8], 1024   ;;  %p6706_p0 = pmov %p6705_p9 }
  0xb1   : > { %vm555_vm0 = vcmask 261120   ;;  %v544_v0 = vld [vmem:[%s6620_s4] sm:$0xff]  ;;  %v545_v1 = vld [vmem:[%s6620_s4 + $0x8] sm:$0xff]  ;;  %v546_v2 = vld [vmem:[%s6620_s4 + $0x10] sm:$0xff]  ;;  %vm5416_vm1 = vmmov 0   ;;  %p522_p3 = scmp.lt.s32.totalorder %s5501_s21, 1 }
  0xb2   : > { %5391 = vsyncadd (%p6706_p0), [#allocation8], 4294966272  ;;  %v581_v3 = vand.u32 4294901760, %v544_v0  ;;  %v584_v4 = vand.u32 4294901760, %v545_v1  ;;  %v547_v5 = vld [vmem:[%s6620_s4 + $0x18] sm:$0xff]  ;;  %v587_v6 = vand.u32 4294901760, %v546_v2 }
  0xb3   : > { %v534_v7 = vld [vmem:[%s5699_s2] sm:$0xff]  ;;  %v535_v8 = vld [vmem:[%s5699_s2 + $0x8] sm:$0xff]  ;;  %v590_v9 = vand.u32 4294901760, %v547_v5  ;;  %v536_v12 = vld [vmem:[%s5699_s2 + $0x10] sm:$0xff]  ;;  %s6763_s21 = smov (!%p522_p3, %s5501_s21), 1  ;;  %vm2233_vm2 = vcmask 1041409  }
  0xb4   : > { %v557_v10 = vsel %vm555_vm0, %v534_v7, 0  ;;  %v560_v11 = vsel %vm555_vm0, %v535_v8, 0  ;;  %v537_v13 = vld [vmem:[%s5699_s2 + $0x18] sm:$0xff]  ;;  %v5736_v14 = vpack.c.bf16 %v584_v4, %v581_v3  ;;  %v5742_v17 = vsub.f32 %v544_v0, %v581_v3  ;;  %v538_v38 = vld [vmem:[%s5699_s2 + $0x20] sm:$0xff]  ;;  %v539_v47 = vld [vmem:[%s5699_s2 + $0x28] sm:$0xff]  ;;  %s6042_s16 = sshll.u32 %s6763_s21, 3 }
  0xb5   : > { %v5738_v15 = vand.u32 4294901760, %v557_v10  ;;  %v5740_v16 = vand.u32 4294901760, %v560_v11  ;;  %v5744_v18 = vpack.c.bf16 %v590_v9, %v587_v6  ;;  %v5746_v19 = vsub.f32 %v545_v1, %v584_v4  ;;  %v540_v52 = vld [vmem:[%s5699_s2 + $0x30] sm:$0xff]  ;;  %v541_v57 = vld [vmem:[%s5699_s2 + $0x38] sm:$0xff]  ;;  %v5818_v1 = vld [vmem:[#allocation7] sm:$0xff]  ;;  %s525_s29 = scalar_lea.vmem %s6617_s1, %s6042_s16  ;;  %s5420_s19 = smov 32  }
  0xb6   : > { %v563_v20 = vsel %vm555_vm0, %v536_v12, 0  ;;  %v566_v21 = vsel %vm555_vm0, %v537_v13, 0  ;;  %4787 = vmatprep.subr.bf16.mxu1 %v5736_v14  ;;  %v732_v24 = vand.u32 4294901760, %v5742_v17  ;;  %v5765_v28 = vsub.f32 %v546_v2, %v587_v6  ;;  %v1458_v2 = vld [vmem:[#allocation7 + $0x8] sm:$0xff]  ;;  %s6730_s6 = sld [smem:[#allocation40_spill]]  ;;  %s6756_s28 = sld [smem:[#allocation41_spill]] }
  0xb7   : > { %v5752_v22 = vsub.f32 %v557_v10, %v5738_v15  ;;  %v5755_v23 = vsub.f32 %v560_v11, %v5740_v16  ;;  %v5758_v25 = vand.u32 4294901760, %v563_v20  ;;  %4496 = vmatprep.mubr.f32.mxu0 %v5738_v15  ;;  %4789 = vmatpush3.bf16.msra.mxu1 %v5736_v14  ;;  %v739_v26 = vand.u32 4294901760, %v5746_v19  ;;  %v543_v6 = vld [vmem:[%s5706_s15] sm:$0xff]  ;;  %v1459_v10 = vld [vmem:[#allocation7 + $0x10] sm:$0xff] }
  0xb8   : > { %v5763_v27 = vand.u32 4294901760, %v566_v21  ;;  %v5767_v29 = vsub.f32 %v547_v5, %v590_v9  ;;  %4791 = vmatprep.subr.bf16.mxu1 %v5744_v18  ;;  %v733_v32 = vsub.f32 %v5742_v17, %v732_v24  ;;  %v746_v36 = vand.u32 4294901760, %v5765_v28 }
  0xb9   : > { %v651_v30 = vand.u32 4294901760, %v5752_v22  ;;  %v661_v31 = vand.u32 4294901760, %v5755_v23  ;;  %v5776_v33 = vsub.f32 %v563_v20, %v5758_v25  ;;  %v740_v34 = vsub.f32 %v5746_v19, %v739_v26 }
  0xba   : > { %v5782_v35 = vsub.f32 %v566_v21, %v5763_v27  ;;  %v753_v37 = vand.u32 4294901760, %v5767_v29  ;;  %v734_v41 = vand.u32 4294901760, %v733_v32  ;;  %v747_v45 = vsub.f32 %v5765_v28, %v746_v36  ;;  %v1460_v21 = vld [vmem:[#allocation7 + $0x18] sm:$0xff] }
  0xbb   : > { %v652_v39 = vsub.f32 %v5752_v22, %v651_v30  ;;  %v662_v40 = vsub.f32 %v5755_v23, %v661_v31  ;;  %v671_v42 = vand.u32 4294901760, %v5776_v33  ;;  %4793 = vmatpush3.bf16.msra.mxu1 %v5744_v18  ;;  %v741_v43 = vand.u32 4294901760, %v740_v34 }
  0xbc   : > { %v681_v44 = vand.u32 4294901760, %v5782_v35  ;;  %v754_v46 = vsub.f32 %v5767_v29, %v753_v37  ;;  %v569_v51 = vsel %vm555_vm0, %v538_v38, 0  ;;  %v748_v55 = vand.u32 4294901760, %v747_v45  ;;  %s529_s10 = scalar_lea.vmem %s6730_s6, %s6042_s16  ;;  %s533_s20 = scalar_lea.vmem %s6756_s28, %s6042_s16 }
  0xbd   : > { %v653_v48 = vand.u32 4294901760, %v652_v39  ;;  %v663_v49 = vand.u32 4294901760, %v662_v40  ;;  %v672_v50 = vsub.f32 %v5776_v33, %v671_v42  ;;  %v4794_v53 = vpack.c.bf16 %v741_v43, %v734_v41 }
  0xbe   : > { %v682_v54 = vsub.f32 %v5782_v35, %v681_v44  ;;  %v755_v56 = vand.u32 4294901760, %v754_v46  ;;  %v5812_v59 = vand.u32 4294901760, %v569_v51  ;;  %v572_v60 = vsel %vm555_vm0, %v539_v47, 0 }
  0xbf   : > { %4476 = vmatprep.mubr.f32.mxu1 %v653_v48  ;;  %v673_v58 = vand.u32 4294901760, %v672_v50  ;;  %4795 = vmatprep.subr.bf16.mxu0 %v4794_v53  ;;  %v5815_v63 = vand.u32 4294901760, %v572_v60  ;;  %v575_v0 = vsel %vm555_vm0, %v540_v52, 0  ;;  %v578_v5 = vsel %vm555_vm0, %v541_v57, 0 }
  0xc0   : > { %4477 = vmatmul.mubr.f32.vlgmr.msra.gmra.mrb[0].mxu1 %v663_v49  ;;  %v683_v61 = vand.u32 4294901760, %v682_v54  ;;  %v4798_v62 = vpack.c.bf16 %v755_v56, %v748_v55  ;;  %4942 = vmatprep.subr.bf16.mxu1 %v4794_v53  ;;  %v5821_v3 = vsub.f32 %v569_v51, %v5812_v59  ;;  %v5823_v4 = vand.u32 4294901760, %v575_v0 }
  0xc1   : > { %4797 = vmatpush3.bf16.msra.mxu0 %v4794_v53  ;;  %4944 = vmatpush3.bf16.msra.mxu1 %v4794_v53  ;;  %v5828_v7 = vsub.f32 %v572_v60, %v5815_v63  ;;  %v4802_v8 = vpack.c.bf16 %v5746_v19, %v5742_v17  ;;  %v5832_v9 = vand.u32 4294901760, %v578_v5  ;;  %v1472_v13 = vand.u32 4294901760, %v5818_v1 }
  0xc2   : > { %4479 = vmatprep.mubr.f32.mxu1 %v673_v58  ;;  %4799 = vmatprep.subr.bf16.mxu0 %v4798_v62  ;;  %v691_v11 = vand.u32 4294901760, %v5821_v3  ;;  %v5836_v12 = vsub.f32 %v575_v0, %v5823_v4  ;;  %v1475_v20 = vand.u32 4294901760, %v1458_v2  ;;  %v1469_v38 = vsel %vm555_vm0, %v543_v6, 0 }
  0xc3   : > { %4943 = vmatprep.subr.bf16.mxu1 %v4798_v62  ;;  %v701_v32 = vand.u32 4294901760, %v5828_v7  ;;  %v5841_v34 = vsub.f32 %v578_v5, %v5832_v9  ;;  %v4806_v41 = vpack.c.bf16 %v5767_v29, %v5765_v28  ;;  %v1478_v43 = vand.u32 4294901760, %v1459_v10  ;;  %v6060_v29 = vld [vmem:[%s525_s29] sm:$0xff] }
  0xc4   : > { %4480 = vmatmul.mubr.f32.gmra.mrb[2].mxu1 %v683_v61  ;;  %v692_v39 = vsub.f32 %v5821_v3, %v691_v11  ;;  %v711_v40 = vand.u32 4294901760, %v5836_v12  ;;  %v1481_v47 = vand.u32 4294901760, %v1460_v21  ;;  %v5854_v48 = vand.u32 4294901760, %v1469_v38 }
  0xc5   : > { %4801 = vmatpush3.bf16.msra.mxu0 %v4798_v62  ;;  %v702_v45 = vsub.f32 %v5828_v7, %v701_v32  ;;  %4945 = vmatpush3.bf16.msra.mxu1 %v4798_v62  ;;  %v721_v46 = vand.u32 4294901760, %v5841_v34  ;;  %v6648_v51 = vmov 0.0|0.0   ;;  %v5861_v52 = vsub.f32 %v5818_v1, %v1472_v13 }
  0xc6   : > { %4803 = vmatprep.subr.bf16.mxu0 %v4802_v8  ;;  %v693_v49 = vand.u32 4294901760, %v692_v39  ;;  %v712_v50 = vsub.f32 %v5836_v12, %v711_v40  ;;  %4834 = vmatprep.subr.bf16.mxu1 %v6648_v51  ;;  %v5863_v53 = vsub.f32 %v1458_v2, %v1475_v20  ;;  %v5871_v58 = vsub.f32 %v1469_v38, %v5854_v48 }
  0xc7   : > { %v703_v54 = vand.u32 4294901760, %v702_v45  ;;  %v722_v55 = vsub.f32 %v5841_v34, %v721_v46  ;;  %v1553_v60 = vand.u32 4294901760, %v5861_v52  ;;  %v5875_v62 = vsub.f32 %v1459_v10, %v1478_v43 }
  0xc8   : > { %4497 = vmatmul.mubr.f32.vlgmr.msra.gmra.mrb[0].mxu0 %v5740_v16  ;;  %4482 = vmatprep.mubr.f32.mxu1 %v693_v49  ;;  %v713_v56 = vand.u32 4294901760, %v712_v50  ;;  %v1560_v61 = vand.u32 4294901760, %v5863_v53  ;;  %v5877_v0 = vsub.f32 %v1460_v21, %v1481_v47  ;;  %v5881_v1 = vpack.c.bf16 %v1475_v20, %v1472_v13 }
  0xc9   : > { %4805 = vmatpush3.bf16.msra.mxu0 %v4802_v8  ;;  %4483 = vmatmul.mubr.f32.gmra.mrb[4].mxu1 %v703_v54  ;;  %v723_v57 = vand.u32 4294901760, %v722_v55  ;;  %v1542_v2 = vand.u32 4294901760, %v5871_v58  ;;  %v1554_v5 = vsub.f32 %v5861_v52, %v1553_v60  ;;  %v1567_v8 = vand.u32 4294901760, %v5875_v62  ;;  %v4300_v54 = vld [vmem:[%s6623_s7] ss:$0 sm:$0xff] }
  0xca   : > { %4499 = vmatprep.mubr.f32.mxu0 %v5758_v25  ;;  %4485 = vmatprep.mubr.f32.mxu1 %v713_v56  ;;  %v1561_v6 = vsub.f32 %v5863_v53, %v1560_v61  ;;  %v1574_v10 = vand.u32 4294901760, %v5877_v0  ;;  %v5898_v13 = vpack.c.bf16 %v1481_v47, %v1478_v43  ;;  %v4818_v21 = vpack.c.bf16 %v739_v26, %v732_v24 }
  0xcb   : > { %4807 = vmatprep.subr.bf16.mxu0 %v4806_v41  ;;  %v1543_v20 = vsub.f32 %v5871_v58, %v1542_v2  ;;  %v1555_v38 = vand.u32 4294901760, %v1554_v5  ;;  %v6646_v19 = vmov 0.0   ;;  %v4822_v49 = vpack.c.bf16 %v753_v37, %v746_v36 }
  0xcc   : > { %4500 = vmatmul.mubr.f32.gmra.mrb[2].mxu0 %v5763_v27  ;;  %v1562_v39 = vand.u32 4294901760, %v1561_v6  ;;  %v1575_v43 = vsub.f32 %v5877_v0, %v1574_v10  ;;  %v5945_v50 = vpack.c.bf16 %v5863_v53, %v5861_v52  ;;  %v5999_v28 = vpack.c.bf16 %v1574_v10, %v1567_v8 }
  0xcd   : > { %4809 = vmatpush3.bf16.msra.mxu0 %v4806_v41  ;;  %4516 = vmatprep.mubr.f32.mxu0 %v5752_v22  ;;  %v1568_v41 = vsub.f32 %v5875_v62, %v1567_v8  ;;  %v1544_v17 = vand.u32 4294901760, %v1543_v20  ;;  %v5956_v22 = vpack.c.bf16 %v5877_v0, %v5875_v62  ;;  %vm2235_vm3 = vcmask 1042434  }
  0xce   : > { %4486 = vmatmul.mubr.f32.gmra.mrb[6].mxu1 %v723_v57  ;;  %4811 = vmatprep.subr.bf16.mxu0 %v5736_v14  ;;  %v5924_v24 = vpack.c.bf16 %v1562_v39, %v1555_v38  ;;  %v1576_v45 = vand.u32 4294901760, %v1575_v43  ;;  %vm2237_vm4 = vcmask 1043459   ;;  %vm2239_vm5 = vcmask 1044484  }
  0xcf   : > { %4502 = vmatprep.mubr.f32.mxu1 %v5812_v59  ;;  %v1569_v26 = vand.u32 4294901760, %v1568_v41  ;;  %vm2241_vm6 = vcmask 1045509   ;;  %vm2243_vm7 = vcmask 1046534   ;;  %vm2245_vm8 = vcmask 1047559  }
  0xd0   : > { %4517 = vmatmul.mubr.f32.vlgmr.msra.gmra.mrb[0].mxu0 %v5755_v23  ;;  %v5985_v23 = vpack.c.bf16 %v1560_v61, %v1553_v60  ;;  %vm2248_vm9 = vcmask 64512  }
  0xd1   : > { %4519 = vmatprep.mubr.f32.mxu0 %v5776_v33  ;;  %4813 = vmatpush3.bf16.msra.mxu0 %v5736_v14  ;;  %v5930_v47 = vpack.c.bf16 %v1576_v45, %v1569_v26 }
  0xd2   : > { %4503 = vmatmul.mubr.f32.vlgmr.msra.gmra.mrb[4].mxu1 %v5815_v63  ;;  %4815 = vmatprep.subr.bf16.mxu0 %v5744_v18 }
  0xd3   : > { %4836 = vmatpush3.bf16.msra.mxu1 %v5881_v1  ;;  %4505 = vmatprep.mubr.f32.mxu1 %v5823_v4 }
  0xd4   : > { %4520 = vmatmul.mubr.f32.gmra.mrb[2].mxu0 %v5782_v35  ;;  %4837 = vmatprep.subr.bf16.mxu1 %v6648_v51 }
  0xd5   : > { %4522 = vmatprep.mubr.f32.mxu0 %v5821_v3  ;;  %4817 = vmatpush3.bf16.msra.mxu0 %v5744_v18 }
  0xd6   : > { %4506 = vmatmul.mubr.f32.gmra.mrb[6].mxu1 %v5832_v9  ;;  %4819 = vmatprep.subr.bf16.mxu0 %v4818_v21 }
  0xd7   : > { %4839 = vmatpush3.bf16.msra.mxu1 %v5898_v13  ;;  %4596 = vmatprep.mubr.msk.f32.mxu1 %vm5416_vm1, %v6646_v19 }
  0xd8   : > { %4523 = vmatmul.mubr.f32.gmra.mrb[4].mxu0 %v5828_v7  ;;  %4840 = vmatprep.subr.bf16.mxu1 %v6648_v51 }
  0xd9   : > { %4525 = vmatprep.mubr.f32.mxu0 %v5836_v12 }
  0xda   : > { %4597 = vmatmul.mubr.f32.vlgmr.msra.gmra.mrb[8].mxu1 %v1544_v17 }
  0xdb   : > { %4842 = vmatpush3.bf16.msra.mxu1 %v5924_v24  ;;  %4607 = vmatprep.mubr.msk.f32.mxu1 %vm5416_vm1, %v6646_v19 }
  0xdc   : > { %4526 = vmatmul.mubr.f32.gmra.mrb[6].mxu0 %v5841_v34  ;;  %4843 = vmatprep.subr.bf16.mxu1 %v6648_v51 }
  0xdd   : > { %4536 = vmatprep.mubr.f32.mxu0 %v651_v30 }
  0xdf   : > { %4845 = vmatpush3.bf16.msra.mxu1 %v5930_v47 }
  0xe0   : > { %4537 = vmatmul.mubr.f32.vlgmr.msra.gmra.mrb[0].mxu0 %v661_v31  ;;  %4846 = vmatprep.subr.bf16.mxu1 %v6648_v51 }
  0xe1   : > { %4539 = vmatprep.mubr.f32.mxu0 %v671_v42  ;;  %4821 = vmatpush3.bf16.msra.mxu0 %v4818_v21 }
  0xe2   : > { %4608 = vmatmul.mubr.f32.vlgmr.msra.gmra.mrb[8].mxu1 %v5854_v48  ;;  %4823 = vmatprep.subr.bf16.mxu0 %v4822_v49 }
  0xe3   : > { %4848 = vmatpush3.bf16.msra.mxu1 %v5945_v50  ;;  %4618 = vmatprep.mubr.msk.f32.mxu1 %vm5416_vm1, %v6646_v19 }
  0xe4   : > { %4540 = vmatmul.mubr.f32.gmra.mrb[2].mxu0 %v681_v44  ;;  %4849 = vmatprep.subr.bf16.mxu1 %v6648_v51 }
  0xe5   : > { %4542 = vmatprep.mubr.f32.mxu0 %v691_v11  ;;  %4825 = vmatpush3.bf16.msra.mxu0 %v4822_v49 }
  0xe6   : > { %4827 = vmatprep.subr.bf16.mxu0 %v5736_v14 }
  0xe7   : > { %4851 = vmatpush3.bf16.msra.mxu1 %v5956_v22 }
  0xe8   : > { %4543 = vmatmul.mubr.f32.gmra.mrb[4].mxu0 %v701_v32  ;;  %4852 = vmatprep.subr.bf16.mxu1 %v6648_v51  ;;  %v5418_v32 = vmov 1966171168  }
  0xe9   : > { %4545 = vmatprep.mubr.f32.mxu0 %v711_v40  ;;  %v1370_v34 = vunpack.c.l.s4 %v5418_v32  ;;  %v4299_v40 = vld [vmem:[%s6621_s5] ss:$0 sm:$0xff] }
  0xea   : > { %4619 = vmatmul.mubr.f32.vlgmr.msra.gmra.mrb[8].mxu1 %v5871_v58  ;;  %v1366_v58 = vld [vmem:[%s5712_s23] sm:$0xff] }
  0xeb   : > { %4854 = vmatpush3.bf16.msra.mxu1 %v5881_v1  ;;  %4629 = vmatprep.mubr.msk.f32.mxu1 %vm5416_vm1, %v6646_v19  ;;  %v1368_v26 = vcombine.high %v1366_v58, %v1366_v58 }
  0xec   : > { %4546 = vmatmul.mubr.f32.gmra.mrb[6].mxu0 %v721_v46  ;;  %4855 = vmatprep.subr.bf16.mxu1 %v6648_v51  ;;  %v1371_v46 = vunpack.c.0.s8 %v1370_v34 }
  0xed   : > { %4556 = vmatprep.mubr.f32.mxu0 %v5738_v15 }
  0xef   : > { %4857 = vmatpush3.bf16.msra.mxu1 %v5898_v13 }
  0xf0   : > { %4557 = vmatmul.mubr.f32.vlgmr.msra.gmra.mrb[0].mxu0 %v5740_v16  ;;  %4858 = vmatprep.subr.bf16.mxu1 %v6648_v51 }
  0xf1   : > { %4559 = vmatprep.mubr.f32.mxu0 %v5758_v25  ;;  %4829 = vmatpush3.bf16.msra.mxu0 %v5736_v14  ;;  %v1372_v14 = vlaneseq }
  0xf2   : > { %4630 = vmatmul.mubr.f32.vlgmr.msra.gmra.mrb[8].mxu1 %v1542_v2  ;;  %4831 = vmatprep.subr.bf16.mxu0 %v5744_v18 }
  0xf3   : > { %4860 = vmatpush3.bf16.msra.mxu1 %v5985_v23  ;;  %4640 = vmatprep.mubr.msk.f32.mxu1 %vm5416_vm1, %v6646_v19 }
  0xf4   : > { %4560 = vmatmul.mubr.f32.gmra.mrb[2].mxu0 %v5763_v27  ;;  %4861 = vmatprep.subr.bf16.mxu1 %v6648_v51 }
  0xf5   : > { %4562 = vmatprep.mubr.f32.mxu0 %v5812_v59  ;;  %4833 = vmatpush3.bf16.msra.mxu0 %v5744_v18 }
  0xf6   : > { %4906 = vmatprep.subr.bf16.mxu0 %v6648_v51 }
  0xf7   : > { %4863 = vmatpush3.bf16.msra.mxu1 %v5999_v28 }
  0xf8   : > { %4563 = vmatmul.mubr.f32.gmra.mrb[4].mxu0 %v5815_v63  ;;  %4864 = vmatprep.subr.bf16.mxu1 %v6648_v51 }
  0xf9   : > { %4565 = vmatprep.mubr.f32.mxu0 %v5823_v4 }
  0xfa   : > { %4641 = vmatmul.mubr.f32.vlgmr.msra.gmra.mrb[8].mxu1 %v5854_v48 }
  0xfb   : > { %4866 = vmatpush3.bf16.msra.mxu1 %v5881_v1  ;;  %4651 = vmatprep.mubr.msk.f32.mxu1 %vm5416_vm1, %v6646_v19 }
  0xfc   : > { %4566 = vmatmul.mubr.f32.gmra.mrb[6].mxu0 %v5832_v9  ;;  %4867 = vmatprep.subr.bf16.mxu1 %v6648_v51 }
  0xfd   : > { %4576 = vmatprep.mubr.f32.mxu0 %v5738_v15  ;;  %v6040_v15 = vshrl.u32 %v1372_v14, 7 }
  0xff   : > { %4869 = vmatpush3.bf16.msra.mxu1 %v5898_v13  ;;  %v6048_v18 = vsub.s32 1, %v6040_v15  ;;  %v6069_v35 = vsub.s32 3, %v6040_v15  ;;  %v6076_v42 = vsub.s32 5, %v6040_v15  ;;  %v6087_v55 = vsub.s32 %v1371_v46, %v6040_v15 }
 0x100   : > { %4577 = vmatmul.mubr.f32.vlgmr.msra.gmra.mrb[0].mxu0 %v5740_v16  ;;  %4870 = vmatprep.subr.bf16.mxu1 %v6648_v51  ;;  %v6045_v16 = vsub.s32 0, %v6040_v15 }
 0x101   : > { %4579 = vmatprep.mubr.f32.mxu0 %v5758_v25  ;;  %4908 = vmatpush3.bf16.msra.mxu0 %v5881_v1  ;;  %6707 = vst [vmem:[#allocation16_spill] sm:$0xff] %v6048_v18  ;;  %v6055_v25 = vsub.s32 2, %v6040_v15  ;;  %v2105_v30 = vrot.slane %v6060_v29, %v6048_v18  ;;  %6710 = vst [vmem:[#allocation19_spill] sm:$0xff] %v6069_v35  ;;  %v2119_v37 = vrot.slane %v6060_v29, %v6069_v35 }
 0x102   : > { %4652 = vmatmul.mubr.f32.vlgmr.msra.gmra.mrb[8].mxu1 %v5854_v48  ;;  %4909 = vmatprep.subr.bf16.mxu0 %v6648_v51  ;;  %v2098_v31 = vrot.slane %v6060_v29, %v6045_v16  ;;  %6711 = vst [vmem:[#allocation20_spill] sm:$0xff] %v6076_v42  ;;  %v2133_v44 = vrot.slane %v6060_v29, %v6076_v42 }
 0x103   : > { %4662 = vmatprep.mubr.msk.f32.mxu1 %vm5416_vm1, %v6646_v19  ;;  %6708 = vst [vmem:[#allocation17_spill] sm:$0xff] %v6055_v25  ;;  %2107 = vbcast.lane.b32.xlu1 %v2105_v30, 256  ;;  %v2112_v33 = vrot.slane %v6060_v29, %v6055_v25  ;;  %v1375_v8 = vrot.slane %v1366_v58, %v6087_v55 }
 0x104   : > { %4580 = vmatmul.mubr.f32.gmra.mrb[2].mxu0 %v5763_v27  ;;  %v6058_v27 = vsub.s32 4, %v6040_v15  ;;  %2100 = vbcast.lane.b32.xlu0 %v2098_v31, 256 }
 0x105   : > { %4582 = vmatprep.mubr.f32.mxu0 %v5812_v59  ;;  %4911 = vmatpush3.bf16.msra.mxu0 %v5898_v13  ;;  %v1391_v31 = vrot.slane %v1375_v8, %v6087_v55 }
 0x106   : > { %4912 = vmatprep.subr.bf16.mxu0 %v6648_v51  ;;  %6709 = vst [vmem:[#allocation18_spill] sm:$0xff] %v6058_v27  ;;  %v2126_v36 = vrot.slane %v6060_v29, %v6058_v27 }
 0x107   : > { %2114 = vbcast.lane.b32.xlu1 %v2112_v33, 256  ;;  %v1383_v33 = vcombine.high %v1375_v8, %v1375_v8 }
 0x108   : > { %4583 = vmatmul.mubr.f32.gmra.mrb[4].mxu0 %v5815_v63  ;;  %2128 = vbcast.lane.b32.xlu0 %v2126_v36, 256 }
 0x109   : > { %4585 = vmatprep.mubr.f32.mxu0 %v5823_v4 }
 0x10b   : > { %2121 = vbcast.lane.b32.xlu1 %v2119_v37, 256 }
 0x10c   : > { %4586 = vmatmul.mubr.f32.gmra.mrb[6].mxu0 %v5832_v9 }
 0x10d   : > { %4728 = vmatprep.mubr.msk.f32.mxu0 %vm5416_vm1, %v6646_v19 }
 0x10f   : > { %2135 = vbcast.lane.b32.xlu1 %v2133_v44, 256 }
 0x193   : > { %v4478_v59 = vpop.f32.mrb[0].mxu1 }
 0x194   : > { %v655_v63 = vpop.f32.mrb[1].mxu1  ;;  %v666_v48 = vadd.f32 %v4478_v59, %v4299_v40 }
 0x195   : > { %v656_v52 = vadd.f32 %v4299_v40, %v655_v63 }
 0x197   : > { %v4481_v3 = vpop.f32.mrb[2].mxu1 }
 0x198   : > { %v675_v4 = vpop.f32.mrb[3].mxu1  ;;  %v686_v62 = vadd.f32 %v4481_v3, %v4299_v40 }
 0x199   : > { %v676_v5 = vadd.f32 %v4299_v40, %v675_v4 }
 0x1a5   : > { %v4504_v7 = vpop.f32.mrb[4].mxu1 }
 0x1a6   : > { %v840_v9 = vpop.f32.mrb[5].mxu1  ;;  %v4954_v45 = vadd.f32 %v4504_v7, %v4299_v40 }
 0x1a7   : > { %v4956_v49 = vadd.f32 %v4299_v40, %v840_v9 }
 0x1a9   : > { %v4507_v11 = vpop.f32.mrb[6].mxu1 }
 0x1aa   : > { %v852_v12 = vpop.f32.mrb[7].mxu1  ;;  %v4958_v3 = vadd.f32 %v4507_v11, %v4299_v40 }
 0x1d3   : > { %v4578_v53 = vpop.f32.mrb[0].mxu0 }
 0x1d4   : > { %v6089_v56 = vadd.f32 %v4578_v53, %v666_v48  ;;  %v1320_v57 = vpop.f32.mrb[1].mxu0 }
 0x1d5   : > { %v1952_v60 = vpop.f32.mrb[8].mxu1  ;;  %v6092_v61 = vadd.f32 %v1320_v57, %v656_v52  ;;  %v4960_v52 = vadd.f32 %v4299_v40, %v852_v12 }
 0x1d6   : > { %v4962_v0 = vadd.f32 %v4300_v54, %v1952_v60  ;;  %v4653_v2 = vpop.f32.mrb[9].mxu1 }
 0x1d7   : > { %v4581_v6 = vpop.f32.mrb[2].mxu0 }
 0x1d8   : > { %v1957_v10 = vcombine.high %v4962_v0, %v4962_v0  ;;  %v1964_v20 = vrot.slane %v4962_v0, %v6087_v55  ;;  %v6096_v21 = vadd.f32 %v4581_v6, %v686_v62  ;;  %v1332_v38 = vpop.f32.mrb[3].mxu0 }
 0x1d9   : > { %v6098_v39 = vadd.f32 %v1332_v38, %v676_v5 }
 0x1da   : > { %v1971_v41 = vrot.slane %v1957_v10, %v6087_v55  ;;  %v1972_v43 = vcombine.high %v1964_v20, %v1964_v20  ;;  %v1980_v17 = vrot.slane %v1964_v20, %v6087_v55 }
 0x1db   : > { %v4584_v30 = vpop.f32.mrb[4].mxu0 }
 0x1dc   : > { %v1973_v36 = vcombine.high %v1971_v41, %v1971_v41  ;;  %v1994_v37 = vrot.slane %v1972_v43, %v6087_v55  ;;  %v2009_v44 = vrot.slane %v1980_v17, %v6045_v16  ;;  %v2002_v59 = vcombine.high %v1980_v17, %v1980_v17  ;;  %v1344_v63 = vpop.f32.mrb[5].mxu0 }
 0x1dd   : > { %v6105_v4 = vadd.f32 %v4954_v45, %v4584_v30  ;;  %v6107_v32 = vadd.f32 %v4956_v49, %v1344_v63  ;;  %v1987_v34 = vrot.slane %v1971_v41, %v6087_v55  ;;  %v1405_v43 = vrot.slane %v1383_v33, %v6087_v55 }
 0x1de   : > { %v2013_v7 = vrot.slane %v1994_v37, %v6045_v16  ;;  %v2046_v9 = vadd.f32 %v6092_v61, %v2009_v44  ;;  %v2004_v46 = vcombine.high %v1994_v37, %v1994_v37  ;;  %v2017_v48 = vrot.slane %v2002_v59, %v6045_v16 }
 0x1df   : > { %v2001_v53 = vrot.slane %v1973_v36, %v6087_v55  ;;  %v2025_v54 = vrot.slane %v1987_v34, %v6045_v16  ;;  %v4587_v57 = vpop.f32.mrb[6].mxu0  ;;  %v2003_v11 = vcombine.high %v1987_v34, %v1987_v34  ;;  %v1382_v17 = vrot.slane %v1368_v26, %v6087_v55 }
 0x1e0   : > { %v2047_v58 = vadd.f32 %v6089_v56, %v2013_v7  ;;  %5108 = vtanh.f32 %v2046_v9  ;;  %v2021_v60 = vrot.slane %v2004_v46, %v6045_v16  ;;  %v2048_v62 = vadd.f32 %v6098_v39, %v2017_v48  ;;  %v1356_v0 = vpop.f32.mrb[7].mxu0 }
 0x1e1   : > { %v2029_v2 = vrot.slane %v2001_v53, %v6045_v16  ;;  %v2050_v5 = vadd.f32 %v6107_v32, %v2025_v54  ;;  %v6120_v6 = vadd.f32 %v4958_v3, %v4587_v57  ;;  %v2005_v12 = vcombine.high %v2001_v53, %v2001_v53 }
 0x1e2   : > { %5110 = vtanh.f32 %v2047_v58  ;;  %v2049_v40 = vadd.f32 %v6096_v21, %v2021_v60  ;;  %v6123_v8 = vadd.f32 %v4960_v52, %v1356_v0  ;;  %v2033_v10 = vrot.slane %v2003_v11, %v6045_v16 }
 0x1e3   : > { %5112 = vtanh.f32 %v2048_v62  ;;  %v2051_v20 = vadd.f32 %v6105_v4, %v2029_v2  ;;  %v2037_v38 = vrot.slane %v2005_v12, %v6045_v16  ;;  %v1413_v45 = vcombine.high %v1391_v31, %v1391_v31 }
 0x1e4   : > { %5114 = vtanh.f32 %v2049_v40  ;;  %v2052_v41 = vadd.f32 %v6123_v8, %v2033_v10  ;;  %v6133_v30 = vrot.slane %v1391_v31, %v6045_v16  ;;  %v1415_v36 = vcombine.high %v1405_v43, %v1405_v43 }
 0x1e5   : > { %5116 = vtanh.f32 %v2050_v5  ;;  %v2053_v49 = vadd.f32 %v6120_v6, %v2037_v38  ;;  %v1384_v37 = vcombine.high %v1382_v17, %v1382_v17  ;;  %v6136_v44 = vrot.slane %v1405_v43, %v6045_v16 }
 0x1e6   : > { %5118 = vtanh.f32 %v2051_v20  ;;  %v1398_v59 = vrot.slane %v1382_v17, %v6087_v55  ;;  %v6140_v33 = vrot.slane %v1413_v45, %v6045_v16  ;;  %v6144_v34 = vrot.slane %v1415_v36, %v6045_v16 }
 0x1e7   : > { %5120 = vtanh.f32 %v2052_v41  ;;  %v1412_v31 = vrot.slane %v1384_v37, %v6087_v55 }
 0x1e8   : > { %6712 = vst [vmem:[#allocation21_spill] sm:$0xff] %v6140_v33  ;;  %5122 = vtanh.f32 %v2053_v49  ;;  %6713 = vst [vmem:[#allocation22_spill] sm:$0xff] %v6144_v34  ;;  %v6150_v48 = vrot.slane %v1398_v59, %v6045_v16  ;;  %v1414_v52 = vcombine.high %v1398_v59, %v1398_v59  ;;  %v5419_v59 = vmov 0  }
 0x1e9   : > { %v6156_v60 = vrot.slane %v1412_v31, %v6045_v16  ;;  %v1416_v62 = vcombine.high %v1412_v31, %v1412_v31  ;;  %5105 = vset.pattern.permute.xlu0 %v5419_v59  ;;  %5106 = vset.pattern.permute.xlu1 %v5419_v59  ;;  %v2200_v59 = vand.u32 127, %v1372_v14 }
 0x1ea   : > { %v5109_v63 = vpop.eup %5108  ;;  %6714 = vst [vmem:[#allocation23_spill] sm:$0xff] %v6150_v48  ;;  %v6161_v12 = vrot.slane %v1414_v52, %v6045_v16 }
 0x1eb   : > { %v2062_v26 = vmul.f32 %v5109_v63, %v6133_v30  ;;  %6715 = vst [vmem:[#allocation24_spill] sm:$0xff] %v6156_v60  ;;  %v6166_v38 = vrot.slane %v1416_v62, %v6045_v16  ;;  %v6175_v63 = vsub.s32 7, %v6040_v15 }
 0x1ec   : > { %v5111_v3 = vpop.eup %5110  ;;  %6716 = vst [vmem:[#allocation25_spill] sm:$0xff] %v6161_v12 }
 0x1ed   : > { %v5113_v7 = vpop.eup %5112  ;;  %v2070_v9 = vsel %vm555_vm0, %v2062_v26, 0.0  ;;  %v2063_v46 = vmul.f32 %v5111_v3, %v6136_v44  ;;  %6717 = vst [vmem:[#allocation26_spill] sm:$0xff] %v6166_v38  ;;  %6718 = vst [vmem:[#allocation27_spill] sm:$0xff] %v6175_v63  ;;  %v6178_v26 = vsub.s32 6, %v6040_v15  ;;  %v2147_v3 = vrot.slane %v6060_v29, %v6175_v63 }
 0x1ee   : > { %v5115_v53 = vpop.eup %5114  ;;  %2071 = vadd.xlane.f32.xlu0 %v2070_v9  ;;  %v2064_v54 = vmul.f32 %v5113_v7, %v6140_v33  ;;  %v6184_v7 = vpop.permute.xlu1 %2107  ;;  %v5215_v33 = vld [vmem:[%s5699_s2 + $0x30] sm:$0xff] }
 0x1ef   : > { %v5117_v57 = vpop.eup %5116  ;;  %v2065_v58 = vmul.f32 %v5115_v53, %v6144_v34  ;;  %v2073_v2 = vsel %vm555_vm0, %v2063_v46, 0.0  ;;  %6719 = vst [vmem:[#allocation28_spill] sm:$0xff] %v6178_v26  ;;  %v2140_v31 = vrot.slane %v6060_v29, %v6178_v26  ;;  %6720 = vst [vmem:[#allocation29_spill] sm:$0xff] %v6184_v7  ;;  %v6188_v46 = vpop.permute.xlu0 %2100 }
 0x1f0   : > { %v2076_v11 = vsel %vm555_vm0, %v2064_v54, 0.0  ;;  %v5119_v0 = vpop.eup %5118  ;;  %v2066_v5 = vmul.f32 %v5117_v57, %v6150_v48  ;;  %6722 = vst [vmem:[#allocation31_spill] sm:$0xff] %v6188_v46 }
 0x1f1   : > { %2077 = vadd.xlane.f32.xlu1 %v2076_v11  ;;  %v5121_v40 = vpop.eup %5120  ;;  %v2079_v10 = vsel %vm555_vm0, %v2065_v58, 0.0  ;;  %v2067_v20 = vmul.f32 %v5119_v0, %v6156_v60 }
 0x1f2   : > { %2074 = vadd.xlane.f32.xlu0 %v2073_v2  ;;  %v5123_v41 = vpop.eup %5122  ;;  %v2082_v43 = vsel %vm555_vm0, %v2066_v5, 0.0  ;;  %v2068_v17 = vmul.f32 %v5121_v40, %v6161_v12  ;;  %v6186_v9 = vpop.permute.xlu1 %2114 }
 0x1f3   : > { %v2085_v45 = vsel %vm555_vm0, %v2067_v20, 0.0  ;;  %v2069_v49 = vmul.f32 %v5123_v41, %v6166_v38  ;;  %6721 = vst [vmem:[#allocation30_spill] sm:$0xff] %v6186_v9  ;;  %v6192_v53 = vpop.permute.xlu0 %2128 }
 0x1f4   : > { %v2088_v36 = vsel %vm555_vm0, %v2068_v17, 0.0  ;;  %6724 = vst [vmem:[#allocation33_spill] sm:$0xff] %v6192_v53 }
 0x1f5   : > { %2080 = vadd.xlane.f32.xlu1 %v2079_v10  ;;  %v2091_v37 = vsel %vm555_vm0, %v2069_v49, 0.0 }
 0x1f6   : > { %2083 = vadd.xlane.f32.xlu0 %v2082_v43  ;;  %v6190_v52 = vpop.permute.xlu1 %2121 }
 0x1f7   : > { %6723 = vst [vmem:[#allocation32_spill] sm:$0xff] %v6190_v52 }
 0x1f9   : > { %2086 = vadd.xlane.f32.xlu1 %v2085_v45 }
 0x1fa   : > { %2089 = vadd.xlane.f32.xlu0 %v2088_v36  ;;  %v6194_v54 = vpop.permute.xlu1 %2135 }
 0x1fb   : > { %6725 = vst [vmem:[#allocation34_spill] sm:$0xff] %v6194_v54 }
 0x1fd   : > { %2092 = vadd.xlane.f32.xlu1 %v2091_v37 }
 0x20e   : > { %2149 = vbcast.lane.b32.xlu1 %v2147_v3, 256 }
 0x210   : > { %2142 = vbcast.lane.b32.xlu0 %v2140_v31, 256  ;;  %v6225_v31 = vsub.s32 %v2200_v59, %v6040_v15 }
 0x212   : > { %6728 = vst [vmem:[#allocation37_spill] sm:$0xff] %v6225_v31 }
 0x27b   : > { %v2072_v57 = vpop.xlane.xlu0 %2071 }
 0x27c   : > { %v6197_v11 = vadd.f32 %v6188_v46, %v2072_v57 }
 0x27e   : > { %v2078_v58 = vpop.xlane.xlu1 %2077  ;;  %2176 = vperm.xlu0 %5105, %v6197_v11  }
 0x27f   : > { %v2075_v29 = vpop.xlane.xlu0 %2074  ;;  %v2161_v40 = vadd.f32 %v6186_v9, %v2078_v58 }
 0x280   : > { %v2160_v62 = vadd.f32 %v6184_v7, %v2075_v29 }
 0x282   : > { %v2081_v0 = vpop.xlane.xlu1 %2080  ;;  %2179 = vperm.xlu1 %5106, %v2160_v62  }
 0x283   : > { %v6202_v2 = vadd.f32 %v6190_v52, %v2081_v0  ;;  %v2084_v5 = vpop.xlane.xlu0 %2083 }
 0x284   : > { %v2163_v43 = vadd.f32 %v6192_v53, %v2084_v5 }
 0x285   : > { %2185 = vperm.xlu0 %5105, %v6202_v2  }
 0x286   : > { %v2087_v10 = vpop.xlane.xlu1 %2086  ;;  %2182 = vperm.xlu1 %5106, %v2161_v40  }
 0x287   : > { %v6207_v20 = vadd.f32 %v6194_v54, %v2087_v10  ;;  %v2090_v41 = vpop.xlane.xlu0 %2089 }
 0x289   : > { %2191 = vperm.xlu0 %5105, %v6207_v20  }
 0x28a   : > { %v2093_v17 = vpop.xlane.xlu1 %2092  ;;  %2188 = vperm.xlu1 %5106, %v2163_v43  }
 0x28b   : > { %v6211_v45 = vpop.permute.xlu0 %2142 }
 0x28c   : > { %6726 = vst [vmem:[#allocation35_spill] sm:$0xff] %v6211_v45  ;;  %v6214_v49 = vadd.f32 %v6211_v45, %v2090_v41 }
 0x28e   : > { %v6216_v36 = vpop.permute.xlu1 %2149  ;;  %2194 = vperm.xlu1 %5106, %v6214_v49  }
 0x28f   : > { %6727 = vst [vmem:[#allocation36_spill] sm:$0xff] %v6216_v36  ;;  %v6220_v37 = vadd.f32 %v6216_v36, %v2093_v17 }
 0x291   : > { %2197 = vperm.xlu0 %5105, %v6220_v37  }
 0x2fd   : > { %v2177_v3 = vpop.permute.xlu0 %2176 }
 0x2fe   : > { %v2204_v0 = vrot.slane %v2177_v3, %v6225_v31 }
 0x301   : > { %v2180_v57 = vpop.permute.xlu1 %2179 }
 0x302   : > { %v2208_v58 = vrot.slane %v2180_v57, %v6225_v31 }
 0x304   : > { %v2186_v29 = vpop.permute.xlu0 %2185  ;;  %v2234_v41 = vsel %vm2233_vm2, %v2208_v58, %v2204_v0 }
 0x305   : > { %v2183_v5 = vpop.permute.xlu1 %2182  ;;  %v2216_v14 = vrot.slane %v2186_v29, %v6225_v31 }
 0x306   : > { %v2212_v10 = vrot.slane %v2183_v5, %v6225_v31 }
 0x308   : > { %v2236_v17 = vsel %vm2235_vm3, %v2212_v10, %v2234_v41  ;;  %v2192_v59 = vpop.permute.xlu0 %2191 }
 0x309   : > { %v2189_v15 = vpop.permute.xlu1 %2188  ;;  %v2238_v19 = vsel %vm2237_vm4, %v2216_v14, %v2236_v17  ;;  %v2224_v51 = vrot.slane %v2192_v59, %v6225_v31 }
 0x30a   : > { %v2220_v57 = vrot.slane %v2189_v15, %v6225_v31 }
 0x30c   : > { %v2240_v3 = vsel %vm2239_vm5, %v2220_v57, %v2238_v19 }
 0x30d   : > { %v2195_v5 = vpop.permute.xlu1 %2194  ;;  %v2242_v0 = vsel %vm2241_vm6, %v2224_v51, %v2240_v3 }
 0x30e   : > { %v2228_v58 = vrot.slane %v2195_v5, %v6225_v31 }
 0x310   : > { %v2198_v10 = vpop.permute.xlu0 %2197  ;;  %v2244_v29 = vsel %vm2243_vm7, %v2228_v58, %v2242_v0 }
 0x311   : > { %v2232_v41 = vrot.slane %v2198_v10, %v6225_v31 }
 0x313   : > { %v2246_v17 = vsel %vm2245_vm8, %v2232_v41, %v2244_v29 }
 0x314   : > { %v2249_v19 = vsel %vm2248_vm9, %v2246_v17, -inf }
 0x315   : > { %2250 = vmax.xlane.f32.xlu1 %v2249_v19 }
 0x3a2   : > { %v2251_v14 = vpop.xlane.xlu1 %2250 }
 0x3a3   : > { %v2256_v15 = vrot.slane %v2251_v14, %v6045_v16  ;;  %v2260_v59 = vrot.slane %v2251_v14, %v6048_v18  ;;  %v2264_v57 = vrot.slane %v2251_v14, %v6055_v25  ;;  %v2268_v58 = vrot.slane %v2251_v14, %v6069_v35 }
 0x3a4   : > { %v2272_v29 = vrot.slane %v2251_v14, %v6058_v27  ;;  %v2276_v19 = vrot.slane %v2251_v14, %v6076_v42 }
 0x3a5   : > { %v2293_v51 = vsub.f32 %v6197_v11, %v2256_v15  ;;  %v2294_v3 = vsub.f32 %v2160_v62, %v2260_v59  ;;  %v2295_v0 = vsub.f32 %v2161_v40, %v2264_v57  ;;  %v2296_v41 = vsub.f32 %v6202_v2, %v2268_v58 }
 0x3a6   : > { %v2297_v36 = vsub.f32 %v2163_v43, %v2272_v29  ;;  %v2280_v11 = vrot.slane %v2251_v14, %v6178_v26  ;;  %v2298_v62 = vsub.f32 %v6207_v20, %v2276_v19  ;;  %v2284_v2 = vrot.slane %v2251_v14, %v6175_v63 }
 0x3a7   : > { %v2301_v5 = vmul.f32 1.442695, %v2293_v51  ;;  %v2303_v10 = vmul.f32 1.442695, %v2294_v3  ;;  %v2305_v17 = vmul.f32 1.442695, %v2295_v0 }
 0x3a8   : > { %v2307_v45 = vmul.f32 1.442695, %v2296_v41  ;;  %v2309_v40 = vmul.f32 1.442695, %v2297_v36  ;;  %v2299_v43 = vsub.f32 %v6214_v49, %v2280_v11  ;;  %v2311_v59 = vmul.f32 1.442695, %v2298_v62 }
 0x3a9   : > { %5124 = vpow2.f32 %v2301_v5  ;;  %v2300_v51 = vsub.f32 %v6220_v37, %v2284_v2 }
 0x3aa   : > { %5126 = vpow2.f32 %v2303_v10  ;;  %v2313_v20 = vmul.f32 1.442695, %v2299_v43 }
 0x3ab   : > { %5128 = vpow2.f32 %v2305_v17  ;;  %v2315_v36 = vmul.f32 1.442695, %v2300_v51 }
 0x3ac   : > { %5130 = vpow2.f32 %v2307_v45 }
 0x3ad   : > { %5132 = vpow2.f32 %v2309_v40 }
 0x3ae   : > { %5134 = vpow2.f32 %v2311_v59 }
 0x3af   : > { %5136 = vpow2.f32 %v2313_v20 }
 0x3b0   : > { %5138 = vpow2.f32 %v2315_v36 }
 0x3b3   : > { %v6251_v54 = vpop.eup %5124 }
 0x3b4   : > { %2326 = vperm.xlu0 %5105, %v6251_v54   ;;  %v6256_v15 = vpop.eup %5126 }
 0x3b5   : > { %v6261_v57 = vpop.eup %5128 }
 0x3b6   : > { %v6265_v45 = vpop.eup %5130 }
 0x3b7   : > { %v5133_v3 = vpop.eup %5132 }
 0x3b8   : > { %2329 = vperm.xlu0 %5105, %v6256_v15   ;;  %v6268_v49 = vpop.eup %5134 }
 0x3b9   : > { %v6271_v14 = vpop.eup %5136 }
 0x3ba   : > { %v6274_v37 = vpop.eup %5138 }
 0x3bc   : > { %2332 = vperm.xlu0 %5105, %v6261_v57  }
 0x3c0   : > { %2335 = vperm.xlu0 %5105, %v6265_v45  }
 0x3c4   : > { %2338 = vperm.xlu0 %5105, %v5133_v3  }
 0x3c8   : > { %2341 = vperm.xlu0 %5105, %v6268_v49  }
 0x3cc   : > { %2344 = vperm.xlu0 %5105, %v6271_v14  }
 0x3d0   : > { %2347 = vperm.xlu0 %5105, %v6274_v37  }
 0x433   : > { %v2327_v5 = vpop.permute.xlu0 %2326 }
 0x434   : > { %v2352_v11 = vrot.slane %v2327_v5, %v6225_v31 }
 0x437   : > { %v2330_v58 = vpop.permute.xlu0 %2329 }
 0x438   : > { %v2356_v17 = vrot.slane %v2330_v58, %v6225_v31 }
 0x43a   : > { %v2381_v43 = vsel %vm2233_vm2, %v2356_v17, %v2352_v11 }
 0x43b   : > { %v2333_v0 = vpop.permute.xlu0 %2332 }
 0x43c   : > { %v2360_v19 = vrot.slane %v2333_v0, %v6225_v31 }
 0x43e   : > { %v2382_v51 = vsel %vm2235_vm3, %v2360_v19, %v2381_v43 }
 0x43f   : > { %v2336_v10 = vpop.permute.xlu0 %2335 }
 0x440   : > { %v2364_v62 = vrot.slane %v2336_v10, %v6225_v31 }
 0x442   : > { %v2383_v36 = vsel %vm2237_vm4, %v2364_v62, %v2382_v51 }
 0x443   : > { %v2339_v29 = vpop.permute.xlu0 %2338 }
 0x444   : > { %v2368_v40 = vrot.slane %v2339_v29, %v6225_v31 }
 0x446   : > { %v2384_v58 = vsel %vm2239_vm5, %v2368_v40, %v2383_v36 }
 0x447   : > { %v2342_v41 = vpop.permute.xlu0 %2341 }
 0x448   : > { %v2372_v59 = vrot.slane %v2342_v41, %v6225_v31 }
 0x44a   : > { %v2385_v5 = vsel %vm2241_vm6, %v2372_v59, %v2384_v58 }
 0x44b   : > { %v2345_v2 = vpop.permute.xlu0 %2344 }
 0x44c   : > { %v2376_v20 = vrot.slane %v2345_v2, %v6225_v31 }
 0x44e   : > { %v2386_v29 = vsel %vm2243_vm7, %v2376_v20, %v2385_v5 }
 0x44f   : > { %v2348_v0 = vpop.permute.xlu0 %2347 }
 0x450   : > { %v2380_v10 = vrot.slane %v2348_v0, %v6225_v31 }
 0x452   : > { %v2387_v52 = vsel %vm2245_vm8, %v2380_v10, %v2386_v29 }
 0x453   : > { %v2389_v17 = vsel %vm2248_vm9, %v2387_v52, 0.0 }
 0x454   : > { %2390 = vadd.xlane.f32.xlu0 %v2389_v17 }
 0x4e1   : > { %v2391_v41 = vpop.xlane.xlu0 %2390 }
 0x4e2   : > { %v2412_v19 = vrot.slane %v2391_v41, %v6058_v27  ;;  %v2396_v11 = vrot.slane %v2391_v41, %v6045_v16  ;;  %v2400_v62 = vrot.slane %v2391_v41, %v6048_v18  ;;  %v2404_v40 = vrot.slane %v2391_v41, %v6055_v25  ;;  %v5213_v25 = vld [vmem:[%s5699_s2 + $0x18] sm:$0xff] }
 0x4e3   : > { %v2408_v2 = vrot.slane %v2391_v41, %v6069_v35  ;;  %v2416_v52 = vrot.slane %v2391_v41, %v6076_v42  ;;  %v2420_v58 = vrot.slane %v2391_v41, %v6178_v26  ;;  %v2424_v10 = vrot.slane %v2391_v41, %v6175_v63  ;;  %v2553_v41 = vld [vmem:[#allocation9] sm:$0xff]  ;;  %v5212_v63 = vld [vmem:[%s5699_s2 + $0x10] sm:$0xff] }
 0x4e4   : > { %5140 = vrcp.f32 %v2412_v19 }
 0x4e5   : > { %5142 = vrcp.f32 %v2396_v11 }
 0x4e6   : > { %5144 = vrcp.f32 %v2400_v62 }
 0x4e7   : > { %5146 = vrcp.f32 %v2404_v40 }
 0x4e8   : > { %5148 = vrcp.f32 %v2408_v2  ;;  %v2555_v2 = vld [vmem:[#allocation9 + $0x10] sm:$0xff] }
 0x4e9   : > { %5150 = vrcp.f32 %v2416_v52 }
 0x4ea   : > { %5152 = vrcp.f32 %v2420_v58 }
 0x4eb   : > { %5154 = vrcp.f32 %v2424_v10 }
 0x4ee   : > { %v5141_v43 = vpop.eup %5140 }
 0x4ef   : > { %v5143_v59 = vpop.eup %5142  ;;  %v2442_v51 = vmul.f32 %v5141_v43, %v5133_v3  ;;  %v2575_v43 = vand.u32 4294901760, %v2553_v41 }
 0x4f0   : > { %v2434_v20 = vmul.f32 %v5143_v59, %v6251_v54  ;;  %v5145_v36 = vpop.eup %5144 }
 0x4f1   : > { %2471 = vperm.xlu0 %5105, %v2442_v51   ;;  %v2436_v0 = vmul.f32 %v5145_v36, %v6256_v15  ;;  %v5147_v5 = vpop.eup %5146  ;;  %v2556_v51 = vld [vmem:[#allocation9 + $0x18] sm:$0xff] }
 0x4f2   : > { %2451 = vperm.xlu1 %5106, %v2434_v20   ;;  %v2438_v3 = vmul.f32 %v5147_v5, %v6261_v57  ;;  %v5149_v29 = vpop.eup %5148  ;;  %v2554_v57 = vld [vmem:[#allocation9 + $0x8] sm:$0xff]  ;;  %v2584_v52 = vand.u32 4294901760, %v2556_v51 }
 0x4f3   : > { %v2440_v54 = vmul.f32 %v5149_v29, %v6265_v45  ;;  %v5151_v17 = vpop.eup %5150  ;;  %v2578_v59 = vand.u32 4294901760, %v2554_v57  ;;  %v2581_v45 = vand.u32 4294901760, %v2555_v2 }
 0x4f4   : > { %v2444_v19 = vmul.f32 %v5151_v17, %v6268_v49  ;;  %v5153_v11 = vpop.eup %5152  ;;  %v6310_v49 = vsub.f32 %v2553_v41, %v2575_v43  ;;  %v6316_v58 = vsub.f32 %v2556_v51, %v2584_v52 }
 0x4f5   : > { %v2446_v15 = vmul.f32 %v5153_v11, %v6271_v14  ;;  %v5155_v62 = vpop.eup %5154  ;;  %v6308_v20 = vpack.c.bf16 %v2578_v59, %v2575_v43  ;;  %v6312_v36 = vsub.f32 %v2554_v57, %v2578_v59  ;;  %v6314_v14 = vsub.f32 %v2555_v2, %v2581_v45 }
 0x4f6   : > { %2456 = vperm.xlu1 %5106, %v2436_v0   ;;  %v2448_v40 = vmul.f32 %v5155_v62, %v6274_v37  ;;  %v6319_v37 = vpack.c.bf16 %v2584_v52, %v2581_v45  ;;  %v6729_v0 = vmov 0.0|0.0   ;;  %v2656_v5 = vand.u32 4294901760, %v6310_v49  ;;  %v4301_v52 = vld [vmem:[%s6625_s9] ss:$0 sm:$0xff] }
 0x4f7   : > { %4872 = vmatpush3.bf16.msra.mxu1 %v6308_v20  ;;  %v2663_v10 = vand.u32 4294901760, %v6312_v36  ;;  %v2677_v17 = vand.u32 4294901760, %v6316_v58 }
 0x4f8   : > { %4873 = vmatprep.subr.bf16.mxu1 %v6729_v0 }
 0x4f9   : > { %v2664_v29 = vsub.f32 %v6312_v36, %v2663_v10  ;;  %v2678_v62 = vsub.f32 %v6316_v58, %v2677_v17  ;;  %v6340_v51 = vpack.c.bf16 %v2663_v10, %v2656_v5 }
 0x4fa   : > { %2461 = vperm.xlu1 %5106, %v2438_v3   ;;  %v2657_v3 = vsub.f32 %v6310_v49, %v2656_v5 }
 0x4fb   : > { %4875 = vmatpush3.bf16.msra.mxu1 %v6319_v37  ;;  %v2665_v11 = vand.u32 4294901760, %v2664_v29  ;;  %v2679_v57 = vand.u32 4294901760, %v2678_v62 }
 0x4fc   : > { %4876 = vmatprep.subr.bf16.mxu1 %v6729_v0 }
 0x4fe   : > { %2466 = vperm.xlu1 %5106, %v2440_v54   ;;  %v2670_v54 = vand.u32 4294901760, %v6314_v14 }
 0x500   : > { %v6342_v45 = vpack.c.bf16 %v2677_v17, %v2670_v54  ;;  %v5210_v17 = vld [vmem:[%s5699_s2 + $0x8] sm:$0xff] }
 0x502   : > { %2476 = vperm.xlu1 %5106, %v2444_v19   ;;  %v2658_v19 = vand.u32 4294901760, %v2657_v3  ;;  %v5208_v3 = vld [vmem:[%s5706_s15] sm:$0xff] }
 0x506   : > { %2481 = vperm.xlu1 %5106, %v2446_v15   ;;  %v2671_v15 = vsub.f32 %v6314_v14, %v2670_v54 }
 0x508   : > { %v2672_v41 = vand.u32 4294901760, %v2671_v15 }
 0x50a   : > { %2486 = vperm.xlu1 %5106, %v2448_v40   ;;  %v6332_v40 = vpack.c.bf16 %v2665_v11, %v2658_v19  ;;  %v6334_v2 = vpack.c.bf16 %v2679_v57, %v2672_v41  ;;  %v5209_v19 = vld [vmem:[%s5699_s2] sm:$0xff] }
 0x50b   : > { %v5211_v57 = vld [vmem:[%s5699_s2 + $0x20] sm:$0xff] }
 0x50e   : > { %3065 = vrot.lane.b32.xlu1 %v4301_v52, %s5420_s19 }
 0x512   : > { %3075 = vrot.lane.b32.xlu1 %v5208_v3, %s5420_s19 }
 0x570   : > { %v2472_v54 = vpop.permute.xlu0 %2471 }
 0x571   : > { %v2452_v29 = vpop.permute.xlu1 %2451  ;;  %v2493_v59 = vmul.f32 %v5211_v57, %v2472_v54 }
 0x572   : > { %v2489_v11 = vmul.f32 %v5209_v19, %v2452_v29 }
 0x573   : > { %v2525_v19 = vsel %vm555_vm0, %v2493_v59, 0.0  ;;  %v3997_v59 = vrot.slane %v2452_v29, %v6225_v31 }
 0x574   : > { %v2497_v5 = vsel %vm555_vm0, %v2489_v11, 0.0  ;;  %v2526_v53 = vrot.slane %v2525_v19, 4 }
 0x575   : > { %v2457_v10 = vpop.permute.xlu1 %2456  ;;  %v2498_v62 = vrot.slane %v2497_v5, 4 }
 0x576   : > { %v2490_v15 = vmul.f32 %v5210_v17, %v2457_v10  ;;  %v4001_v57 = vrot.slane %v2457_v10, %v6225_v31 }
 0x577   : > { %v2499_v3 = vadd.f32 %v2498_v62, %v2497_v5 }
 0x578   : > { %v2504_v41 = vsel %vm555_vm0, %v2490_v15, 0.0  ;;  %v4026_v10 = vsel %vm2233_vm2, %v4001_v57, %v3997_v59 }
 0x579   : > { %v2505_v52 = vrot.slane %v2504_v41, 4  ;;  %v2462_v43 = vpop.permute.xlu1 %2461  ;;  %v2500_v15 = vrot.slane %v2499_v3, 2 }
 0x57a   : > { %v2491_v26 = vmul.f32 %v5212_v63, %v2462_v43  ;;  %v4005_v63 = vrot.slane %v2462_v43, %v6225_v31 }
 0x57b   : > { %v2506_v11 = vadd.f32 %v2505_v52, %v2504_v41  ;;  %v5214_v52 = vld [vmem:[%s5699_s2 + $0x28] sm:$0xff]  ;;  %v2501_v46 = vadd.f32 %v2500_v15, %v2499_v3 }
 0x57c   : > { %v2511_v42 = vsel %vm555_vm0, %v2491_v26, 0.0  ;;  %v4027_v43 = vsel %vm2235_vm3, %v4005_v63, %v4026_v10 }
 0x57d   : > { %v2512_v27 = vrot.slane %v2511_v42, 4  ;;  %v2467_v35 = vpop.permute.xlu1 %2466  ;;  %v2507_v7 = vrot.slane %v2506_v11, 2  ;;  %v2502_v15 = vrot.slane %v2501_v46, 1 }
 0x57e   : > { %v2492_v17 = vmul.f32 %v5213_v25, %v2467_v35  ;;  %v4009_v41 = vrot.slane %v2467_v35, %v6225_v31 }
 0x57f   : > { %v2513_v18 = vadd.f32 %v2512_v27, %v2511_v42  ;;  %v2527_v42 = vadd.f32 %v2526_v53, %v2525_v19  ;;  %v2508_v38 = vadd.f32 %v2507_v7, %v2506_v11  ;;  %v4013_v53 = vrot.slane %v2472_v54, %v6225_v31 }
 0x580   : > { %v2518_v9 = vsel %vm555_vm0, %v2492_v17, 0.0  ;;  %v4028_v48 = vsel %vm2237_vm4, %v4009_v41, %v4027_v43 }
 0x581   : > { %v2519_v5 = vrot.slane %v2518_v9, 4  ;;  %v2477_v26 = vpop.permute.xlu1 %2476  ;;  %v2514_v62 = vrot.slane %v2513_v18, 2  ;;  %v2528_v11 = vrot.slane %v2527_v42, 2  ;;  %v2509_v63 = vrot.slane %v2508_v38, 1 }
 0x582   : > { %v2494_v25 = vmul.f32 %v5214_v52, %v2477_v26  ;;  %v4017_v35 = vrot.slane %v2477_v26, %v6225_v31 }
 0x583   : > { %v2520_v27 = vadd.f32 %v2519_v5, %v2518_v9  ;;  %v2515_v29 = vadd.f32 %v2514_v62, %v2513_v18  ;;  %v4029_v18 = vsel %vm2239_vm5, %v4013_v53, %v4028_v48  ;;  %v2529_v48 = vadd.f32 %v2528_v11, %v2527_v42 }
 0x584   : > { %v2532_v17 = vsel %vm555_vm0, %v2494_v25, 0.0 }
 0x585   : > { %v2521_v60 = vrot.slane %v2520_v27, 2  ;;  %v2533_v34 = vrot.slane %v2532_v17, 4  ;;  %v2482_v12 = vpop.permute.xlu1 %2481  ;;  %v2516_v62 = vrot.slane %v2515_v29, 1 }
 0x586   : > { %v2495_v9 = vmul.f32 %v5215_v33, %v2482_v12  ;;  %v4021_v7 = vrot.slane %v2482_v12, %v6225_v31  ;;  %v4030_v33 = vsel %vm2241_vm6, %v4017_v35, %v4029_v18 }
 0x587   : > { %v2522_v3 = vadd.f32 %v2521_v60, %v2520_v27  ;;  %v2534_v19 = vadd.f32 %v2533_v34, %v2532_v17  ;;  %v5216_v34 = vld [vmem:[%s5699_s2 + $0x38] sm:$0xff]  ;;  %v2510_v17 = vadd.f32 %v2509_v63, %v2508_v38  ;;  %v2517_v53 = vadd.f32 %v2516_v62, %v2515_v29  ;;  %s5421_s2 = smov 96  }
 0x588   : > { %v2539_v57 = vsel %vm555_vm0, %v2495_v9, 0.0  ;;  %v4031_v25 = vsel %vm2243_vm7, %v4021_v7, %v4030_v33  ;;  %v2503_v9 = vadd.f32 %v2502_v15, %v2501_v46 }
 0x589   : > { %v2535_v5 = vrot.slane %v2534_v19, 2  ;;  %v2540_v59 = vrot.slane %v2539_v57, 4  ;;  %v2487_v26 = vpop.permute.xlu1 %2486  ;;  %v2523_v54 = vrot.slane %v2522_v3, 1 }
 0x58a   : > { %v2496_v60 = vmul.f32 %v5216_v34, %v2487_v26  ;;  %v4025_v12 = vrot.slane %v2487_v26, %v6225_v31 }
 0x58b   : > { %v2536_v41 = vadd.f32 %v2535_v5, %v2534_v19  ;;  %v2541_v52 = vadd.f32 %v2540_v59, %v2539_v57  ;;  %v2524_v18 = vadd.f32 %v2523_v54, %v2522_v3  ;;  %v2530_v19 = vrot.slane %v2529_v48, 1 }
 0x58c   : > { %v2546_v27 = vsel %vm555_vm0, %v2496_v60, 0.0  ;;  %v4032_v10 = vsel %vm2245_vm8, %v4025_v12, %v4031_v25  ;;  %v2565_v57 = vsel %vm2233_vm2, %v2510_v17, %v2503_v9 }
 0x58d   : > { %v2542_v43 = vrot.slane %v2541_v52, 2  ;;  %v2547_v35 = vrot.slane %v2546_v27, 4  ;;  %4034 = vst.msk [vmem:[%s529_s10] sm:$0xff] %vm2248_vm9, %v4032_v10  ;;  %v2537_v34 = vrot.slane %v2536_v41, 1  ;;  %v2566_v11 = vsel %vm2235_vm3, %v2517_v53, %v2565_v57 }
 0x58e   : > { %v2567_v5 = vsel %vm2237_vm4, %v2524_v18, %v2566_v11  ;;  %v2531_v59 = vadd.f32 %v2530_v19, %v2529_v48  ;;  %v6732_v48 = vpack.c.bf16 %v6312_v36, %v6310_v49 }
 0x58f   : > { %v2543_v26 = vadd.f32 %v2542_v43, %v2541_v52  ;;  %v2548_v31 = vadd.f32 %v2547_v35, %v2546_v27  ;;  %v2538_v38 = vadd.f32 %v2537_v34, %v2536_v41 }
 0x590   : > { %v2568_v46 = vsel %vm2239_vm5, %v2531_v59, %v2567_v5 }
 0x591   : > { %v2544_v7 = vrot.slane %v2543_v26, 1  ;;  %v2549_v42 = vrot.slane %v2548_v31, 2  ;;  %v2569_v29 = vsel %vm2241_vm6, %v2538_v38, %v2568_v46 }
 0x593   : > { %v2550_v63 = vadd.f32 %v2549_v42, %v2548_v31  ;;  %v2545_v33 = vadd.f32 %v2544_v7, %v2543_v26  ;;  %v6731_v31 = vmov 0.0  }
 0x595   : > { %v2551_v60 = vrot.slane %v2550_v63, 1  ;;  %v2570_v15 = vsel %vm2243_vm7, %v2545_v33, %v2569_v29 }
 0x597   : > { %v2552_v3 = vadd.f32 %v2551_v60, %v2550_v63 }
 0x599   : > { %v2571_v62 = vsel %vm2245_vm8, %v2552_v3, %v2570_v15 }
 0x59a   : > { %v2572_v12 = vsel %vm555_vm0, %v2571_v62, 0 }
 0x59b   : > { %v2643_v54 = vand.u32 4294901760, %v2572_v12 }
 0x59d   : > { %v2644_v52 = vsub.f32 %v2572_v12, %v2643_v54 }
 0x59f   : > { %v2645_v25 = vand.u32 4294901760, %v2644_v52 }
 0x5a1   : > { %v2646_v27 = vsub.f32 %v2644_v52, %v2645_v25 }
 0x5a3   : > { %v2647_v41 = vand.u32 4294901760, %v2646_v27 }
 0x5a5   : > { %4663 = vmatmul.mubr.f32.vlgmr.msra.gmra.mrb[10].mxu1 %v2647_v41 }
 0x5a6   : > { %4878 = vmatpush3.bf16.msra.mxu1 %v6332_v40  ;;  %4673 = vmatprep.mubr.msk.f32.mxu1 %vm5416_vm1, %v6731_v31  ;;  %v6733_v40 = vpack.c.bf16 %v6316_v58, %v6314_v14  ;;  %v3066_v14 = vpop.permute.xlu1 %3065 }
 0x5a7   : > { %4879 = vmatprep.subr.bf16.mxu1 %v6729_v0 }
 0x5aa   : > { %4881 = vmatpush3.bf16.msra.mxu1 %v6334_v2  ;;  %v3076_v10 = vpop.permute.xlu1 %3075 }
 0x5ab   : > { %4882 = vmatprep.subr.bf16.mxu1 %v6729_v0 }
 0x5ad   : > { %4674 = vmatmul.mubr.f32.vlgmr.msra.gmra.mrb[10].mxu1 %v2643_v54 }
 0x5ae   : > { %4884 = vmatpush3.bf16.msra.mxu1 %v6732_v48  ;;  %4684 = vmatprep.mubr.msk.f32.mxu1 %vm5416_vm1, %v6731_v31 }
 0x5af   : > { %4885 = vmatprep.subr.bf16.mxu1 %v6729_v0 }
 0x5b2   : > { %4887 = vmatpush3.bf16.msra.mxu1 %v6733_v40 }
 0x5b3   : > { %4888 = vmatprep.subr.bf16.mxu1 %v6729_v0 }
 0x5b5   : > { %4685 = vmatmul.mubr.f32.vlgmr.msra.gmra.mrb[10].mxu1 %v2644_v52 }
 0x5b6   : > { %4890 = vmatpush3.bf16.msra.mxu1 %v6308_v20  ;;  %4695 = vmatprep.mubr.msk.f32.mxu1 %vm5416_vm1, %v6731_v31 }
 0x5b7   : > { %4891 = vmatprep.subr.bf16.mxu1 %v6729_v0 }
 0x5ba   : > { %4893 = vmatpush3.bf16.msra.mxu1 %v6319_v37 }
 0x5bb   : > { %4894 = vmatprep.subr.bf16.mxu1 %v6729_v0 }
 0x5bd   : > { %4696 = vmatmul.mubr.f32.vlgmr.msra.gmra.mrb[10].mxu1 %v2645_v25 }
 0x5be   : > { %4896 = vmatpush3.bf16.msra.mxu1 %v6340_v51  ;;  %4706 = vmatprep.mubr.msk.f32.mxu1 %vm5416_vm1, %v6731_v31 }
 0x5bf   : > { %4897 = vmatprep.subr.bf16.mxu1 %v6729_v0 }
 0x5c2   : > { %4899 = vmatpush3.bf16.msra.mxu1 %v6342_v45 }
 0x5c3   : > { %4900 = vmatprep.subr.bf16.mxu1 %v6729_v0 }
 0x5c5   : > { %4707 = vmatmul.mubr.f32.vlgmr.msra.gmra.mrb[10].mxu1 %v2643_v54 }
 0x5c6   : > { %4902 = vmatpush3.bf16.msra.mxu1 %v6308_v20  ;;  %4717 = vmatprep.mubr.msk.f32.mxu1 %vm5416_vm1, %v6731_v31 }
 0x5c7   : > { %4903 = vmatprep.subr.bf16.mxu1 %v6729_v0 }
 0x5ca   : > { %4905 = vmatpush3.bf16.msra.mxu1 %v6319_v37 }
 0x5cd   : > { %4718 = vmatmul.mubr.f32.vlgmr.msra.gmra.mrb[10].mxu1 %v2643_v54 }
 0x6a0   : > { %v3055_v49 = vpop.f32.mrb[10].mxu1 }
 0x6a1   : > { %3081 = vrot.lane.b32.xlu1 %v3055_v49, %s5420_s19  ;;  %v4719_v36 = vpop.f32.mrb[11].mxu1  ;;  %v3068_v58 = vadd.f32 %v3066_v14, %v3055_v49 }
 0x6a3   : > { %v4302_v2 = vmul.f32 -1.442695, %v3068_v58 }
 0x6a5   : > { %5156 = vpow2.f32 %v4302_v2 }
 0x6af   : > { %v5157_v51 = vpop.eup %5156 }
 0x6b0   : > { %v3072_v45 = vadd.f32 1.0, %v5157_v51  ;;  %v6735_v51 = vld [vmem:[#allocation23_spill] sm:$0xff] }
 0x6b2   : > { %5158 = vrcp.f32 %v3072_v45 }
 0x6bc   : > { %v5159_v20 = vpop.eup %5158 }
 0x6bd   : > { %v3079_v17 = vsub.f32 1.0, %v5159_v20  ;;  %v3078_v35 = vmul.f32 %v5159_v20, %v3076_v10  ;;  %v6736_v20 = vld [vmem:[#allocation25_spill] sm:$0xff] }
 0x713   : > { %v3082_v43 = vpop.permute.xlu1 %3081 }
 0x714   : > { %v3084_v9 = vmul.f32 %v3082_v43, %v3079_v17 }
 0x716   : > { %v3085_v53 = vadd.f32 %v3084_v9, %v3078_v35 }
 0x718   : > { %3087 = vrot.lane.b32.xlu0 %v3085_v53, %s5421_s2 }
 0x78a   : > { %v3088_v37 = vpop.permute.xlu0 %3087 }
 0x78b   : > { %v3089_v18 = vsel %vm555_vm0, %v3088_v37, 0  ;;  %v6738_v37 = vld [vmem:[#allocation24_spill] sm:$0xff] }
 0x78c   : > { %v3160_v34 = vand.u32 4294901760, %v3089_v18 }
 0x78e   : > { %v3161_v26 = vsub.f32 %v3089_v18, %v3160_v34 }
 0x790   : > { %v3162_v19 = vand.u32 4294901760, %v3161_v26 }
 0x792   : > { %v3163_v57 = vsub.f32 %v3161_v26, %v3162_v19 }
 0x794   : > { %v3164_v7 = vand.u32 4294901760, %v3163_v57 }
 0x796   : > { %4729 = vmatmul.mubr.f32.vlgmr.msra.gmra.mrb[8].mxu0 %v3164_v7 }
 0x797   : > { %4914 = vmatpush3.bf16.msra.mxu0 %v5924_v24  ;;  %4739 = vmatprep.mubr.msk.f32.mxu0 %vm5416_vm1, %v6731_v31 }
 0x798   : > { %4915 = vmatprep.subr.bf16.mxu0 %v6729_v0 }
 0x79b   : > { %4917 = vmatpush3.bf16.msra.mxu0 %v5930_v47  ;;  %v5217_v47 = vld [vmem:[%s6623_s7] ss:$0 sm:$0xff] }
 0x79c   : > { %4918 = vmatprep.subr.bf16.mxu0 %v6729_v0 }
 0x79e   : > { %4740 = vmatmul.mubr.f32.vlgmr.msra.gmra.mrb[8].mxu0 %v3160_v34 }
 0x79f   : > { %4920 = vmatpush3.bf16.msra.mxu0 %v5945_v50  ;;  %4750 = vmatprep.mubr.msk.f32.mxu0 %vm5416_vm1, %v6731_v31 }
 0x7a0   : > { %4921 = vmatprep.subr.bf16.mxu0 %v6729_v0 }
 0x7a3   : > { %4923 = vmatpush3.bf16.msra.mxu0 %v5956_v22 }
 0x7a4   : > { %4924 = vmatprep.subr.bf16.mxu0 %v6729_v0 }
 0x7a6   : > { %4751 = vmatmul.mubr.f32.vlgmr.msra.gmra.mrb[8].mxu0 %v3161_v26 }
 0x7a7   : > { %4926 = vmatpush3.bf16.msra.mxu0 %v5881_v1  ;;  %4761 = vmatprep.mubr.msk.f32.mxu0 %vm5416_vm1, %v6731_v31 }
 0x7a8   : > { %4927 = vmatprep.subr.bf16.mxu0 %v6729_v0 }
 0x7ab   : > { %4929 = vmatpush3.bf16.msra.mxu0 %v5898_v13 }
 0x7ac   : > { %4930 = vmatprep.subr.bf16.mxu0 %v6729_v0 }
 0x7ae   : > { %4762 = vmatmul.mubr.f32.vlgmr.msra.gmra.mrb[8].mxu0 %v3162_v19  ;;  %v6739_v19 = vld [vmem:[#allocation26_spill] sm:$0xff] }
 0x7af   : > { %4932 = vmatpush3.bf16.msra.mxu0 %v5985_v23  ;;  %4772 = vmatprep.mubr.msk.f32.mxu0 %vm5416_vm1, %v6731_v31 }
 0x7b0   : > { %4933 = vmatprep.subr.bf16.mxu0 %v6729_v0 }
 0x7b3   : > { %4935 = vmatpush3.bf16.msra.mxu0 %v5999_v28 }
 0x7b4   : > { %4936 = vmatprep.subr.bf16.mxu0 %v6729_v0 }
 0x7b6   : > { %4773 = vmatmul.mubr.f32.vlgmr.msra.gmra.mrb[8].mxu0 %v3160_v34 }
 0x7b7   : > { %4938 = vmatpush3.bf16.msra.mxu0 %v5881_v1  ;;  %4783 = vmatprep.mubr.msk.f32.mxu0 %vm5416_vm1, %v6731_v31 }
 0x7b8   : > { %4939 = vmatprep.subr.bf16.mxu0 %v6729_v0 }
 0x7bb   : > { %4941 = vmatpush3.bf16.msra.mxu0 %v5898_v13 }
 0x7be   : > { %4784 = vmatmul.mubr.f32.vlgmr.msra.gmra.mrb[8].mxu0 %v3160_v34 }
 0x891   : > { %v3572_v24 = vpop.f32.mrb[8].mxu0 }
 0x892   : > { %v4963_v50 = vadd.f32 %v5217_v47, %v3572_v24  ;;  %v4785_v22 = vpop.f32.mrb[9].mxu0  ;;  %v6740_v47 = vld [vmem:[#allocation31_spill] sm:$0xff] }
 0x894   : > { %v3577_v23 = vcombine.high %v4963_v50, %v4963_v50  ;;  %v3584_v28 = vrot.slane %v4963_v50, %v6087_v55 }
 0x896   : > { %v3591_v1 = vrot.slane %v3577_v23, %v6087_v55  ;;  %v3592_v42 = vcombine.high %v3584_v28, %v3584_v28  ;;  %v3600_v11 = vrot.slane %v3584_v28, %v6087_v55  ;;  %v6741_v23 = vld [vmem:[#allocation29_spill] sm:$0xff] }
 0x898   : > { %v3593_v5 = vcombine.high %v3591_v1, %v3591_v1  ;;  %v3607_v0 = vrot.slane %v3591_v1, %v6087_v55  ;;  %v3614_v13 = vrot.slane %v3592_v42, %v6087_v55  ;;  %v3622_v38 = vcombine.high %v3600_v11, %v3600_v11  ;;  %v6742_v42 = vld [vmem:[#allocation30_spill] sm:$0xff] }
 0x899   : > { %v3629_v63 = vrot.slane %v3600_v11, %v6045_v16 }
 0x89a   : > { %v3623_v59 = vcombine.high %v3607_v0, %v3607_v0  ;;  %v3624_v33 = vcombine.high %v3614_v13, %v3614_v13  ;;  %v3633_v60 = vrot.slane %v3614_v13, %v6045_v16  ;;  %v3621_v46 = vrot.slane %v3593_v5, %v6087_v55  ;;  %v6743_v13 = vld [vmem:[#allocation33_spill] sm:$0xff] }
 0x89b   : > { %v3637_v29 = vrot.slane %v3622_v38, %v6045_v16  ;;  %v3645_v3 = vrot.slane %v3607_v0, %v6045_v16  ;;  %v3666_v15 = vadd.f32 %v6092_v61, %v3629_v63 }
 0x89c   : > { %v3641_v62 = vrot.slane %v3624_v33, %v6045_v16  ;;  %v3653_v12 = vrot.slane %v3623_v59, %v6045_v16  ;;  %v3667_v54 = vadd.f32 %v6089_v56, %v3633_v60  ;;  %v3625_v27 = vcombine.high %v3621_v46, %v3621_v46  ;;  %v6744_v59 = vld [vmem:[#allocation32_spill] sm:$0xff]  ;;  %v6745_v60 = vld [vmem:[#allocation34_spill] sm:$0xff] }
 0x89d   : > { %v3668_v52 = vadd.f32 %v6098_v39, %v3637_v29  ;;  %5160 = vtanh.f32 %v3666_v15  ;;  %v3670_v25 = vadd.f32 %v6107_v32, %v3645_v3  ;;  %v3649_v55 = vrot.slane %v3621_v46, %v6045_v16  ;;  %v6746_v15 = vld [vmem:[#allocation35_spill] sm:$0xff] }
 0x89e   : > { %v3669_v41 = vadd.f32 %v6096_v21, %v3641_v62  ;;  %5162 = vtanh.f32 %v3667_v54  ;;  %v3672_v31 = vadd.f32 %v6123_v8, %v3653_v12  ;;  %v3657_v61 = vrot.slane %v3625_v27, %v6045_v16  ;;  %v6747_v12 = vld [vmem:[#allocation36_spill] sm:$0xff] }
 0x89f   : > { %5164 = vtanh.f32 %v3668_v52  ;;  %v3671_v48 = vadd.f32 %v6105_v4, %v3649_v55  ;;  %v6734_v4 = vld [vmem:[#allocation21_spill] sm:$0xff] }
 0x8a0   : > { %5166 = vtanh.f32 %v3670_v25  ;;  %v3673_v39 = vadd.f32 %v6120_v6, %v3657_v61 }
 0x8a1   : > { %5168 = vtanh.f32 %v3669_v41  ;;  %v6748_v41 = vld [vmem:[#allocation37_spill] sm:$0xff] }
 0x8a2   : > { %5170 = vtanh.f32 %v3672_v31 }
 0x8a3   : > { %5172 = vtanh.f32 %v3671_v48 }
 0x8a4   : > { %5174 = vtanh.f32 %v3673_v39 }
 0x8a7   : > { %v5161_v56 = vpop.eup %5160 }
 0x8a8   : > { %v3682_v32 = vmul.f32 %v5161_v56, %v6133_v30  ;;  %v5163_v40 = vpop.eup %5162 }
 0x8a9   : > { %v5165_v49 = vpop.eup %5164  ;;  %v3683_v8 = vmul.f32 %v5163_v40, %v6136_v44  ;;  %v6737_v44 = vld [vmem:[#allocation22_spill] sm:$0xff] }
 0x8aa   : > { %v3690_v21 = vsel %vm555_vm0, %v3682_v32, 0.0  ;;  %v5167_v36 = vpop.eup %5166  ;;  %v3684_v58 = vmul.f32 %v5165_v49, %v6734_v4 }
 0x8ab   : > { %3691 = vadd.xlane.f32.xlu1 %v3690_v21  ;;  %v3693_v14 = vsel %vm555_vm0, %v3683_v8, 0.0  ;;  %v5169_v2 = vpop.eup %5168  ;;  %v3686_v45 = vmul.f32 %v5167_v36, %v6735_v51 }
 0x8ac   : > { %3694 = vadd.xlane.f32.xlu0 %v3693_v14  ;;  %v5171_v6 = vpop.eup %5170  ;;  %v3696_v17 = vsel %vm555_vm0, %v3684_v58, 0.0  ;;  %v3685_v43 = vmul.f32 %v5169_v2, %v6737_v44  ;;  %v6749_v44 = vld [vmem:[#allocation16_spill] sm:$0xff] }
 0x8ad   : > { %v3702_v30 = vsel %vm555_vm0, %v3686_v45, 0.0  ;;  %v3688_v10 = vmul.f32 %v5171_v6, %v6736_v20  ;;  %v5173_v35 = vpop.eup %5172 }
 0x8ae   : > { %v3699_v53 = vsel %vm555_vm0, %v3685_v43, 0.0  ;;  %v3687_v18 = vmul.f32 %v5173_v35, %v6738_v37  ;;  %v5175_v34 = vpop.eup %5174  ;;  %v6750_v35 = vld [vmem:[#allocation17_spill] sm:$0xff] }
 0x8af   : > { %3703 = vadd.xlane.f32.xlu1 %v3702_v30  ;;  %v3708_v9 = vsel %vm555_vm0, %v3688_v10, 0.0  ;;  %v3689_v57 = vmul.f32 %v5175_v34, %v6739_v19  ;;  %v6751_v34 = vld [vmem:[#allocation19_spill] sm:$0xff] }
 0x8b0   : > { %3697 = vadd.xlane.f32.xlu0 %v3696_v17  ;;  %v3705_v26 = vsel %vm555_vm0, %v3687_v18, 0.0 }
 0x8b1   : > { %v3711_v7 = vsel %vm555_vm0, %v3689_v57, 0.0 }
 0x8b3   : > { %3709 = vadd.xlane.f32.xlu1 %v3708_v9 }
 0x8b4   : > { %3700 = vadd.xlane.f32.xlu0 %v3699_v53 }
 0x8b8   : > { %3706 = vadd.xlane.f32.xlu0 %v3705_v26 }
 0x8bc   : > { %3712 = vadd.xlane.f32.xlu0 %v3711_v7  ;;  %v6752_v7 = vld [vmem:[#allocation18_spill] sm:$0xff] }
 0x938   : > { %v3692_v24 = vpop.xlane.xlu1 %3691 }
 0x939   : > { %v3714_v50 = vadd.f32 %v3692_v24, %v6740_v47  ;;  %v3695_v22 = vpop.xlane.xlu0 %3694 }
 0x93a   : > { %v3715_v28 = vadd.f32 %v3695_v22, %v6741_v23  ;;  %v6753_v23 = vld [vmem:[#allocation20_spill] sm:$0xff] }
 0x93b   : > { %3731 = vperm.xlu1 %5106, %v3714_v50  }
 0x93c   : > { %3734 = vperm.xlu0 %5105, %v3715_v28   ;;  %v3704_v5 = vpop.xlane.xlu1 %3703 }
 0x93d   : > { %v3698_v1 = vpop.xlane.xlu0 %3697  ;;  %v3718_v38 = vadd.f32 %v3704_v5, %v6743_v13 }
 0x93e   : > { %v3716_v11 = vadd.f32 %v3698_v1, %v6742_v42 }
 0x940   : > { %3737 = vperm.xlu1 %5106, %v3716_v11   ;;  %v3710_v29 = vpop.xlane.xlu1 %3709 }
 0x941   : > { %v3701_v0 = vpop.xlane.xlu0 %3700  ;;  %v3720_v62 = vadd.f32 %v3710_v29, %v6746_v15 }
 0x942   : > { %v3717_v33 = vadd.f32 %v3701_v0, %v6744_v59  ;;  %v6755_v59 = vld [vmem:[#allocation27_spill] sm:$0xff] }
 0x944   : > { %3743 = vperm.xlu1 %5106, %v3718_v38  }
 0x945   : > { %v3707_v63 = vpop.xlane.xlu0 %3706 }
 0x946   : > { %v3719_v46 = vadd.f32 %v3707_v63, %v6745_v60 }
 0x948   : > { %3740 = vperm.xlu1 %5106, %v3717_v33   ;;  %3746 = vperm.xlu0 %5105, %v3719_v46  }
 0x949   : > { %v3713_v3 = vpop.xlane.xlu0 %3712 }
 0x94a   : > { %v3721_v54 = vadd.f32 %v3713_v3, %v6747_v12 }
 0x94c   : > { %3749 = vperm.xlu1 %5106, %v3720_v62   ;;  %3752 = vperm.xlu0 %5105, %v3721_v54  }
 0x9ba   : > { %v3732_v52 = vpop.permute.xlu1 %3731 }
 0x9bb   : > { %v3735_v27 = vpop.permute.xlu0 %3734  ;;  %v3757_v48 = vrot.slane %v3732_v52, %v6748_v41 }
 0x9bc   : > { %v3761_v31 = vrot.slane %v3735_v27, %v6748_v41 }
 0x9be   : > { %v3786_v32 = vsel %vm2233_vm2, %v3761_v31, %v3757_v48 }
 0x9bf   : > { %v3738_v25 = vpop.permute.xlu1 %3737 }
 0x9c0   : > { %v3765_v61 = vrot.slane %v3738_v25, %v6748_v41 }
 0x9c2   : > { %v3787_v49 = vsel %vm2235_vm3, %v3765_v61, %v3786_v32 }
 0x9c3   : > { %v3744_v55 = vpop.permute.xlu1 %3743 }
 0x9c4   : > { %v3773_v21 = vrot.slane %v3744_v55, %v6748_v41 }
 0x9c7   : > { %v3741_v56 = vpop.permute.xlu1 %3740  ;;  %v3747_v39 = vpop.permute.xlu0 %3746 }
 0x9c8   : > { %v3769_v40 = vrot.slane %v3741_v56, %v6748_v41  ;;  %v3777_v36 = vrot.slane %v3747_v39, %v6748_v41 }
 0x9ca   : > { %v3788_v8 = vsel %vm2237_vm4, %v3769_v40, %v3787_v49 }
 0x9cb   : > { %v3789_v14 = vsel %vm2239_vm5, %v3773_v21, %v3788_v8  ;;  %v3750_v4 = vpop.permute.xlu1 %3749  ;;  %v3753_v58 = vpop.permute.xlu0 %3752 }
 0x9cc   : > { %v3790_v2 = vsel %vm2241_vm6, %v3777_v36, %v3789_v14  ;;  %v3781_v51 = vrot.slane %v3750_v4, %v6748_v41  ;;  %v3785_v45 = vrot.slane %v3753_v58, %v6748_v41 }
 0x9ce   : > { %v3791_v6 = vsel %vm2243_vm7, %v3781_v51, %v3790_v2 }
 0x9cf   : > { %v3792_v30 = vsel %vm2245_vm8, %v3785_v45, %v3791_v6 }
 0x9d0   : > { %v3794_v20 = vsel %vm2248_vm9, %v3792_v30, -inf }
 0x9d1   : > { %3795 = vmax.xlane.f32.xlu1 %v3794_v20 }
 0xa5e   : > { %v3796_v10 = vpop.xlane.xlu1 %3795 }
 0xa5f   : > { %v3801_v17 = vrot.slane %v3796_v10, %v6045_v16  ;;  %v3805_v43 = vrot.slane %v3796_v10, %v6749_v44  ;;  %v3809_v9 = vrot.slane %v3796_v10, %v6750_v35  ;;  %v3813_v26 = vrot.slane %v3796_v10, %v6751_v34 }
 0xa60   : > { %v3817_v24 = vrot.slane %v3796_v10, %v6752_v7  ;;  %v3821_v1 = vrot.slane %v3796_v10, %v6753_v23 }
 0xa61   : > { %v3838_v53 = vsub.f32 %v3714_v50, %v3801_v17  ;;  %v3839_v37 = vsub.f32 %v3715_v28, %v3805_v43  ;;  %v3840_v19 = vsub.f32 %v3716_v11, %v3809_v9  ;;  %v3841_v47 = vsub.f32 %v3717_v33, %v3813_v26  ;;  %v6754_v50 = vld [vmem:[#allocation28_spill] sm:$0xff] }
 0xa62   : > { %v3842_v42 = vsub.f32 %v3718_v38, %v3817_v24  ;;  %v3825_v28 = vrot.slane %v3796_v10, %v6754_v50  ;;  %v3843_v13 = vsub.f32 %v3719_v46, %v3821_v1  ;;  %v3829_v33 = vrot.slane %v3796_v10, %v6755_v59 }
 0xa63   : > { %v3846_v18 = vmul.f32 1.442695, %v3838_v53  ;;  %v3848_v57 = vmul.f32 1.442695, %v3839_v37  ;;  %v3850_v22 = vmul.f32 1.442695, %v3840_v19 }
 0xa64   : > { %v3852_v5 = vmul.f32 1.442695, %v3841_v47  ;;  %v3854_v11 = vmul.f32 1.442695, %v3842_v42  ;;  %v3844_v60 = vsub.f32 %v3720_v62, %v3825_v28  ;;  %v3856_v38 = vmul.f32 1.442695, %v3843_v13 }
 0xa65   : > { %5176 = vpow2.f32 %v3846_v18  ;;  %v3845_v3 = vsub.f32 %v3721_v54, %v3829_v33 }
 0xa66   : > { %5178 = vpow2.f32 %v3848_v57  ;;  %v3858_v15 = vmul.f32 1.442695, %v3844_v60 }
 0xa67   : > { %5180 = vpow2.f32 %v3850_v22  ;;  %v3860_v46 = vmul.f32 1.442695, %v3845_v3 }
 0xa68   : > { %5182 = vpow2.f32 %v3852_v5 }
 0xa69   : > { %5184 = vpow2.f32 %v3854_v11 }
 0xa6a   : > { %5186 = vpow2.f32 %v3856_v38 }
 0xa6b   : > { %5188 = vpow2.f32 %v3858_v15 }
 0xa6c   : > { %5190 = vpow2.f32 %v3860_v46 }
 0xa6f   : > { %v6529_v0 = vpop.eup %5176 }
 0xa70   : > { %3871 = vperm.xlu0 %5105, %v6529_v0   ;;  %v6533_v63 = vpop.eup %5178 }
 0xa71   : > { %v6537_v29 = vpop.eup %5180 }
 0xa72   : > { %v6540_v12 = vpop.eup %5182 }
 0xa73   : > { %v5185_v52 = vpop.eup %5184 }
 0xa74   : > { %3874 = vperm.xlu0 %5105, %v6533_v63   ;;  %v6543_v25 = vpop.eup %5186 }
 0xa75   : > { %v6546_v62 = vpop.eup %5188 }
 0xa76   : > { %v6549_v54 = vpop.eup %5190 }
 0xa78   : > { %3877 = vperm.xlu0 %5105, %v6537_v29  }
 0xa7c   : > { %3880 = vperm.xlu0 %5105, %v6540_v12  }
 0xa80   : > { %3883 = vperm.xlu0 %5105, %v5185_v52  }
 0xa84   : > { %3886 = vperm.xlu0 %5105, %v6543_v25  }
 0xa88   : > { %3889 = vperm.xlu0 %5105, %v6546_v62  }
 0xa8c   : > { %3892 = vperm.xlu0 %5105, %v6549_v54  }
 0xaef   : > { %v3872_v27 = vpop.permute.xlu0 %3871 }
 0xaf0   : > { %v3897_v40 = vrot.slane %v3872_v27, %v6748_v41 }
 0xaf3   : > { %v3875_v55 = vpop.permute.xlu0 %3874 }
 0xaf4   : > { %v3901_v39 = vrot.slane %v3875_v55, %v6748_v41 }
 0xaf6   : > { %v3926_v36 = vsel %vm2233_vm2, %v3901_v39, %v3897_v40 }
 0xaf7   : > { %v3878_v31 = vpop.permute.xlu0 %3877 }
 0xaf8   : > { %v3905_v32 = vrot.slane %v3878_v31, %v6748_v41 }
 0xafa   : > { %v3927_v4 = vsel %vm2235_vm3, %v3905_v32, %v3926_v36 }
 0xafb   : > { %v3881_v61 = vpop.permute.xlu0 %3880 }
 0xafc   : > { %v3909_v49 = vrot.slane %v3881_v61, %v6748_v41 }
 0xafe   : > { %v3928_v2 = vsel %vm2237_vm4, %v3909_v49, %v3927_v4 }
 0xaff   : > { %v3884_v48 = vpop.permute.xlu0 %3883 }
 0xb00   : > { %v3913_v21 = vrot.slane %v3884_v48, %v6748_v41 }
 0xb02   : > { %v3929_v51 = vsel %vm2239_vm5, %v3913_v21, %v3928_v2 }
 0xb03   : > { %v3887_v56 = vpop.permute.xlu0 %3886 }
 0xb04   : > { %v3917_v14 = vrot.slane %v3887_v56, %v6748_v41 }
 0xb06   : > { %v3930_v6 = vsel %vm2241_vm6, %v3917_v14, %v3929_v51 }
 0xb07   : > { %v3890_v8 = vpop.permute.xlu0 %3889 }
 0xb08   : > { %v3921_v58 = vrot.slane %v3890_v8, %v6748_v41 }
 0xb0a   : > { %v3931_v20 = vsel %vm2243_vm7, %v3921_v58, %v3930_v6 }
 0xb0b   : > { %v3893_v45 = vpop.permute.xlu0 %3892 }
 0xb0c   : > { %v3925_v30 = vrot.slane %v3893_v45, %v6748_v41 }
 0xb0e   : > { %v3932_v10 = vsel %vm2245_vm8, %v3925_v30, %v3931_v20 }
 0xb0f   : > { %v3934_v17 = vsel %vm2248_vm9, %v3932_v10, 0.0 }
 0xb10   : > { %3935 = vadd.xlane.f32.xlu0 %v3934_v17 }
 0xb9d   : > { %v3936_v43 = vpop.xlane.xlu0 %3935 }
 0xb9e   : > { %v3957_v9 = vrot.slane %v3936_v43, %v6752_v7  ;;  %v3941_v53 = vrot.slane %v3936_v43, %v6045_v16  ;;  %v3945_v37 = vrot.slane %v3936_v43, %v6749_v44  ;;  %v3949_v18 = vrot.slane %v3936_v43, %v6750_v35 }
 0xb9f   : > { %v3953_v26 = vrot.slane %v3936_v43, %v6751_v34  ;;  %v3961_v47 = vrot.slane %v3936_v43, %v6753_v23  ;;  %v3965_v16 = vrot.slane %v3936_v43, %v6754_v50  ;;  %v3969_v34 = vrot.slane %v3936_v43, %v6755_v59 }
 0xba0   : > { %5192 = vrcp.f32 %v3957_v9 }
 0xba1   : > { %5194 = vrcp.f32 %v3941_v53 }
 0xba2   : > { %5196 = vrcp.f32 %v3945_v37 }
 0xba3   : > { %5198 = vrcp.f32 %v3949_v18 }
 0xba4   : > { %5200 = vrcp.f32 %v3953_v26 }
 0xba5   : > { %5202 = vrcp.f32 %v3961_v47 }
 0xba6   : > { %5204 = vrcp.f32 %v3965_v16 }
 0xba7   : > { %5206 = vrcp.f32 %v3969_v34 }
 0xbaa   : > { %v5193_v19 = vpop.eup %5192 }
 0xbab   : > { %v5195_v57 = vpop.eup %5194  ;;  %v3987_v24 = vmul.f32 %v5193_v19, %v5185_v52 }
 0xbac   : > { %v3979_v7 = vmul.f32 %v5195_v57, %v6529_v0  ;;  %v5197_v22 = vpop.eup %5196 }
 0xbad   : > { %4056 = vperm.xlu0 %5105, %v3987_v24   ;;  %v3981_v44 = vmul.f32 %v5197_v22, %v6533_v63  ;;  %v5199_v35 = vpop.eup %5198 }
 0xbae   : > { %4044 = vperm.xlu1 %5106, %v3979_v7   ;;  %v3983_v1 = vmul.f32 %v5199_v35, %v6537_v29  ;;  %v5201_v42 = vpop.eup %5200 }
 0xbaf   : > { %v3985_v23 = vmul.f32 %v5201_v42, %v6540_v12  ;;  %v5203_v5 = vpop.eup %5202 }
 0xbb0   : > { %v3989_v0 = vmul.f32 %v5203_v5, %v6543_v25  ;;  %v5205_v28 = vpop.eup %5204 }
 0xbb1   : > { %v3991_v50 = vmul.f32 %v5205_v28, %v6546_v62  ;;  %v5207_v13 = vpop.eup %5206 }
 0xbb2   : > { %4047 = vperm.xlu1 %5106, %v3981_v44   ;;  %v3993_v11 = vmul.f32 %v5207_v13, %v6549_v54 }
 0xbb6   : > { %4050 = vperm.xlu1 %5106, %v3983_v1  }
 0xbba   : > { %4053 = vperm.xlu1 %5106, %v3985_v23  }
 0xbbe   : > { %4059 = vperm.xlu1 %5106, %v3989_v0  }
 0xbc2   : > { %4062 = vperm.xlu1 %5106, %v3991_v50  }
 0xbc6   : > { %4065 = vperm.xlu1 %5106, %v3993_v11  }
 0xc2c   : > { %v4057_v46 = vpop.permute.xlu0 %4056 }
 0xc2d   : > { %v4045_v63 = vpop.permute.xlu1 %4044  ;;  %v4086_v55 = vrot.slane %v4057_v46, %v6748_v41 }
 0xc2e   : > { %v4070_v15 = vrot.slane %v4045_v63, %v6748_v41 }
 0xc31   : > { %v4048_v59 = vpop.permute.xlu1 %4047 }
 0xc32   : > { %v4074_v38 = vrot.slane %v4048_v59, %v6748_v41 }
 0xc34   : > { %v4099_v52 = vsel %vm2233_vm2, %v4074_v38, %v4070_v15 }
 0xc35   : > { %v4051_v33 = vpop.permute.xlu1 %4050 }
 0xc36   : > { %v4078_v29 = vrot.slane %v4051_v33, %v6748_v41 }
 0xc38   : > { %v4100_v25 = vsel %vm2235_vm3, %v4078_v29, %v4099_v52 }
 0xc39   : > { %v4054_v60 = vpop.permute.xlu1 %4053 }
 0xc3a   : > { %v4082_v12 = vrot.slane %v4054_v60, %v6748_v41 }
 0xc3c   : > { %v4101_v54 = vsel %vm2237_vm4, %v4082_v12, %v4100_v25 }
 0xc3d   : > { %v4060_v3 = vpop.permute.xlu1 %4059  ;;  %v4102_v61 = vsel %vm2239_vm5, %v4086_v55, %v4101_v54 }
 0xc3e   : > { %v4090_v27 = vrot.slane %v4060_v3, %v6748_v41 }
 0xc40   : > { %v4103_v56 = vsel %vm2241_vm6, %v4090_v27, %v4102_v61 }
 0xc41   : > { %v4063_v62 = vpop.permute.xlu1 %4062 }
 0xc42   : > { %v4094_v31 = vrot.slane %v4063_v62, %v6748_v41 }
 0xc44   : > { %v4104_v32 = vsel %vm2243_vm7, %v4094_v31, %v4103_v56 }
 0xc45   : > { %v4066_v48 = vpop.permute.xlu1 %4065 }
 0xc46   : > { %v4098_v39 = vrot.slane %v4066_v48, %v6748_v41 }
 0xc48   : > { %v4105_v40 = vsel %vm2245_vm8, %v4098_v39, %v4104_v32 }
 0xc49   : > { %4107 = vst.msk [vmem:[%s533_s20] sm:$0xff] %vm2248_vm9, %v4105_v40 }
 0xc4a PF: > { %s6757_s20 = sld [smem:[#allocation14_spill]]  ;;  %s6758_s14 = sld [smem:[#allocation13_spill]] }
 0xc4b   : > { %s6759_s19 = sld [smem:[#allocation15_spill]]  ;;  %s6760_s17 = smov %s5398_s18 }
 0xc50   : > { %p26_p6 = scmp.ge.s32.totalorder %s6757_s20, 4   ;;  %s6761_s18 = smov %s6758_s14 }
 0xc52   :  { %28 = sbr.rel (!%p26_p6) target bundleno = 11 (0xb), region = 147 }
 0xc59   :  { %4141 = vsyncpa [#allocation3], 1 }
 0xc5a   :  { %4143 = vsyncpa [#allocation3 + $0x1], 1 }
 0xc5b   :  { %4144 = vsyncpa [#allocation5], 1 }
 0xc5c   :  { %4146 = vsyncpa [#allocation5 + $0x1], 1 }
 0xc5d   :  { %4147 = vsyncpa [#allocation8], 1 }

</bundles_post_ra>
